<compile_context>
chip_gen: v7x
topology: tpu7x:2x2x1
jax: 0.10.0
libtpu: 0.0.40
codegen_flags: <defaults>
</compile_context>

<pallas_src>
import functools

import jax
import jax.numpy as jnp
from jax.experimental import pallas as pl
from jax.experimental.pallas import tpu as pltpu

NEG_INF = -1e30


# ------------------------------ fused Pallas kernel ---------------------------

def _decoder_layer_kernel(*refs, num_heads, eps, norm_first,
                          has_pos, has_mpos, has_amask, has_pmask):
    it = iter(refs)
    tgt_ref = next(it)
    pos_ref = next(it) if has_pos else None
    mem_ref = next(it)
    mpos_ref = next(it) if has_mpos else None
    amask_ref = next(it) if has_amask else None
    pmask_ref = next(it) if has_pmask else None
    wq_ref, bq_ref = next(it), next(it)
    wk_ref, bk_ref = next(it), next(it)
    wv_ref, bv_ref = next(it), next(it)
    wo_ref, bo_ref = next(it), next(it)
    g1_ref, be1_ref = next(it), next(it)
    g2_ref, be2_ref = next(it), next(it)
    w1_ref, b1_ref = next(it), next(it)
    w2_ref, b2_ref = next(it), next(it)
    o_ref = next(it)
    k_scr = next(it)
    v_scr = next(it)

    H = num_heads
    _, TL, E = tgt_ref.shape
    S = mem_ref.shape[1]
    D = E // H

    def ln(x, g_ref, b_ref):
        # single-pass statistics: var = E[x^2] - E[x]^2
        m = jnp.mean(x, axis=-1, keepdims=True)
        ms = jnp.mean(x * x, axis=-1, keepdims=True)
        var = ms - m * m
        return (x - m) * jax.lax.rsqrt(var + eps) * g_ref[...] + b_ref[...]

    def lin(x_f32, w_ref, b_ref):
        # bf16 MXU matmul, f32 accumulation, f32 bias add
        return jnp.dot(x_f32.astype(jnp.bfloat16), w_ref[...],
                       preferred_element_type=jnp.float32) + b_ref[...]

    # ---- K / V projections: once per batch element, reused across query tiles ----
    @pl.when(pl.program_id(1) == 0)
    def _():
        mem = mem_ref[0].astype(jnp.float32)                         # (S, E)
        k_in = (mem + mpos_ref[0].astype(jnp.float32)) if has_mpos else mem
        k_scr[...] = lin(k_in, wk_ref, bk_ref).astype(jnp.bfloat16)
        v_scr[...] = lin(mem, wv_ref, bv_ref).astype(jnp.bfloat16)

    x0 = tgt_ref[0].astype(jnp.float32)                              # (TL, E)
    x = ln(x0, g1_ref, be1_ref) if norm_first else x0

    q_in = (x + pos_ref[0].astype(jnp.float32)) if has_pos else x
    # wq / bq are pre-scaled by 1/sqrt(D) in the wrapper (scale folded in).
    q = lin(q_in, wq_ref, bq_ref).astype(jnp.bfloat16)               # (TL, E)

    # additive attention mask, shared across heads (built from small factors)
    mask = None
    if has_amask:
        mask = amask_ref[...]                                        # (TL, S)
    if has_pmask:
        pad = pmask_ref[0]                                           # (1, S)
        mask = pad if mask is None else mask + pad

    k = k_scr[...]                                                   # (S, E) bf16
    v = v_scr[...]                                                   # (S, E) bf16

    attn_proj = jnp.zeros((TL, E), jnp.float32)
    for h in range(H):                      # statically unrolled over heads
        sl = slice(h * D, (h + 1) * D)
        qh, kh, vh = q[:, sl], k[:, sl], v[:, sl]
        s = jax.lax.dot_general(qh, kh, (((1,), (1,)), ((), ())),
                                preferred_element_type=jnp.float32)  # (TL, S)
        if mask is not None:
            s = s + mask
        # NOTE: fully-masked rows yield a uniform softmax instead of NaN.
        s = s - jnp.max(s, axis=-1, keepdims=True)
        p = jnp.exp(s)
        denom = jnp.sum(p, axis=-1, keepdims=True)
        oh = jnp.dot(p.astype(jnp.bfloat16), vh,
                     preferred_element_type=jnp.float32)             # (TL, D)
        oh = oh * pl.reciprocal(denom, approx=True)
        # per-head (D, E) out-projection slice, lane-dense f32 accumulate
        attn_proj = attn_proj + jnp.dot(oh.astype(jnp.bfloat16), wo_ref[h],
                                        preferred_element_type=jnp.float32)

    x = x + attn_proj + bo_ref[...]                 # residual 1 (dropout1 = id)

    # ---- MLP block ----
    n2 = ln(x, g2_ref, be2_ref)
    hidden = jnp.maximum(lin(n2, w1_ref, b1_ref), 0.0)              # ReLU
    x = x + lin(hidden, w2_ref, b2_ref)             # residual 2 (dropout2 = id)

    o_ref[0] = x.astype(o_ref.dtype)


# --------------------------------- wrapper ------------------------------------

@functools.partial(jax.jit,
                   static_argnames=("num_heads", "layer_norm_eps", "norm_first"))
def transformer_decoder_layer(params, tgt, memory, pos_emb, memory_pos_emb,
                              memory_mask, memory_key_padding_mask,
                              num_heads, layer_norm_eps=1e-5, norm_first=True):
    L, N, E = tgt.shape
    S = memory.shape[0]
    H = num_heads
    D = E // H
    scale = 1.0 / (D ** 0.5)

    # query tile along L.  TODO(synk): ragged tiles (L % 128 != 0 at large L)
    # would need in-kernel masking; we fall back to a single full-L tile.
    TL = 128 if L % 128 == 0 else L

    # batch-major layout so the kernel body needs no transposes
    tgt_b = jnp.transpose(tgt, (1, 0, 2))
    mem_b = jnp.transpose(memory, (1, 0, 2))

    bf = lambda a: a.astype(jnp.bfloat16)
    row = lambda b: b.reshape(1, -1).astype(jnp.float32)

    tile_spec = pl.BlockSpec((1, TL, E), lambda n, l: (n, l, 0))
    mem_spec = pl.BlockSpec((1, S, E), lambda n, l: (n, 0, 0))

    inputs, in_specs = [tgt_b], [tile_spec]

    has_pos = pos_emb is not None
    if has_pos:
        inputs.append(jnp.transpose(pos_emb, (1, 0, 2)))
        in_specs.append(tile_spec)

    inputs.append(mem_b)
    in_specs.append(mem_spec)

    has_mpos = memory_pos_emb is not None
    if has_mpos:
        inputs.append(jnp.transpose(memory_pos_emb, (1, 0, 2)))
        in_specs.append(mem_spec)

    has_amask = memory_mask is not None
    if has_amask:
        inputs.append(memory_mask.astype(jnp.float32))               # (L, S)
        in_specs.append(pl.BlockSpec((TL, S), lambda n, l: (l, 0)))

    has_pmask = memory_key_padding_mask is not None
    if has_pmask:
        pad_add = jnp.where(memory_key_padding_mask, NEG_INF, 0.0)
        inputs.append(pad_add.astype(jnp.float32).reshape(N, 1, S))  # (N, 1, S)
        in_specs.append(pl.BlockSpec((1, 1, S), lambda n, l: (n, 0, 0)))

    def resident(shape):                 # weights: constant block index -> stays in VMEM
        nd = len(shape)
        return pl.BlockSpec(tuple(shape), lambda n, l, _nd=nd: (0,) * _nd)

    weights = [
        bf(params["wq"] * scale), row(params["bq"] * scale),   # 1/sqrt(D) folded in
        bf(params["wk"]), row(params["bk"]),
        bf(params["wv"]), row(params["bv"]),
        bf(params["wo"]).reshape(H, D, E), row(params["bo"]),
        row(params["norm1_g"]), row(params["norm1_b"]),
        row(params["norm2_g"]), row(params["norm2_b"]),
        bf(params["w1"]), row(params["b1"]),
        bf(params["w2"]), row(params["b2"]),
    ]
    inputs += weights
    in_specs += [resident(w.shape) for w in weights]

    kernel = functools.partial(
        _decoder_layer_kernel, num_heads=num_heads, eps=layer_norm_eps,
        norm_first=norm_first, has_pos=has_pos, has_mpos=has_mpos,
        has_amask=has_amask, has_pmask=has_pmask)

    out_b = pl.pallas_call(
        kernel,
        out_shape=jax.ShapeDtypeStruct((N, L, E), tgt.dtype),
        grid_spec=pltpu.PrefetchScalarGridSpec(
            num_scalar_prefetch=0,
            grid=(N, L // TL),
            in_specs=in_specs,
            out_specs=tile_spec,
            scratch_shapes=[pltpu.VMEM((S, E), jnp.bfloat16),
                            pltpu.VMEM((S, E), jnp.bfloat16)]),
        compiler_params=pltpu.CompilerParams(
            dimension_semantics=("parallel", "arbitrary"),
            vmem_limit_bytes=64 * 1024 * 1024),
    )(*inputs)

    return jnp.transpose(out_b, (1, 0, 2))


# --------------------------- pure-JAX reference ------------------------------

def reference_forward(params, tgt, memory, pos_emb, memory_pos_emb,
                      memory_mask, memory_key_padding_mask,
                      num_heads, layer_norm_eps=1e-5, norm_first=True):
    L, N, E = tgt.shape
    S = memory.shape[0]
    H = num_heads
    D = E // H
    scale = 1.0 / (D ** 0.5)

    def ln(x, g, b):
        m = jnp.mean(x, axis=-1, keepdims=True)
        v = jnp.mean(jnp.square(x - m), axis=-1, keepdims=True)
        return (x - m) / jnp.sqrt(v + layer_norm_eps) * g + b

    def lin(x, w, b):
        return x @ w + b

    def we(x, e):
        return x if e is None else x + e

    def mha(query, key_, value):
        q = lin(query.reshape(L * N, E), params["wq"], params["bq"])
        k = lin(key_.reshape(S * N, E), params["wk"], params["bk"])
        v = lin(value.reshape(S * N, E), params["wv"], params["bv"])
        qh = q.reshape(L, N, H, D).transpose(1, 2, 0, 3)   # (N,H,L,D)
        kh = k.reshape(S, N, H, D).transpose(1, 2, 0, 3)   # (N,H,S,D)
        vh = v.reshape(S, N, H, D).transpose(1, 2, 0, 3)   # (N,H,S,D)
        mask = jnp.zeros((N, 1, L, S), jnp.float32)
        if memory_mask is not None:
            mask = mask + memory_mask.astype(jnp.float32)[None, None, :, :]
        if memory_key_padding_mask is not None:
            mask = mask + jnp.where(memory_key_padding_mask, NEG_INF, 0.0)[:, None, None, :]
        s = jnp.einsum("nhld,nhsd->nhls", qh, kh) * scale + mask
        p = jax.nn.softmax(s, axis=-1)
        oh = jnp.einsum("nhls,nhsd->nhld", p, vh)
        o = oh.transpose(2, 0, 1, 3).reshape(L * N, E)
        return lin(o, params["wo"], params["bo"]).reshape(L, N, E)

    def mlp(x):
        h = jnp.maximum(lin(x.reshape(L * N, E), params["w1"], params["b1"]), 0.0)
        return lin(h, params["w2"], params["b2"]).reshape(L, N, E)

    if norm_first:
        tgt = ln(tgt, params["norm1_g"], params["norm1_b"])
    tgt = tgt + mha(we(tgt, pos_emb), we(memory, memory_pos_emb), memory)
    tgt_norm = ln(tgt, params["norm2_g"], params["norm2_b"])
    return tgt + mlp(tgt_norm)


# --------------------------------- params ------------------------------------

def init_params(key, emb_dim, mlp_factor):
    hidden = mlp_factor * emb_dim
    ks = jax.random.split(key, 12)

    def w(k, shape, scale=0.05):
        return (scale * jax.random.normal(k, shape)).astype(jnp.float32)

    return dict(
        norm1_g=jnp.ones((emb_dim,), jnp.float32),
        norm1_b=jnp.zeros((emb_dim,), jnp.float32),
        norm2_g=jnp.ones((emb_dim,), jnp.float32),
        norm2_b=jnp.zeros((emb_dim,), jnp.float32),
        # MultiheadAttention in-proj (stored transposed: (in, out)) + out-proj
        wq=w(ks[0], (emb_dim, emb_dim)), bq=w(ks[1], (emb_dim,), 0.01),
        wk=w(ks[2], (emb_dim, emb_dim)), bk=w(ks[3], (emb_dim,), 0.01),
        wv=w(ks[4], (emb_dim, emb_dim)), bv=w(ks[5], (emb_dim,), 0.01),
        wo=w(ks[6], (emb_dim, emb_dim)), bo=w(ks[7], (emb_dim,), 0.01),
        # MLP
        w1=w(ks[8], (emb_dim, hidden)), b1=w(ks[9], (hidden,), 0.01),
        w2=w(ks[10], (hidden, emb_dim)), b2=w(ks[11], (emb_dim,), 0.01),
    )


# ---------------------------------- main --------------------------------------

if __name__ == "__main__":
    emb_dim, num_heads, mlp_factor = 32, 4, 4
    L, S, N = 8, 8, 2   # tgt length, memory length, batch

    key = jax.random.PRNGKey(0)
    k1, k2, k3, k4, kp = jax.random.split(key, 5)

    tgt = jax.random.normal(k1, (L, N, emb_dim), jnp.float32)
    memory = jax.random.normal(k2, (S, N, emb_dim), jnp.float32)
    pos_emb = 0.1 * jax.random.normal(k3, (L, N, emb_dim), jnp.float32)
    memory_pos_emb = 0.1 * jax.random.normal(k4, (S, N, emb_dim), jnp.float32)

    # additive float attn mask (L, S): query i may attend keys j <= i + 4
    rows = jnp.arange(L)[:, None]
    cols = jnp.arange(S)[None, :]
    memory_mask = jnp.where(cols > rows + 4, NEG_INF, 0.0).astype(jnp.float32)
    # boolean key padding mask (N, S): last memory position is padding
    memory_key_padding_mask = jnp.zeros((N, S), jnp.bool_).at[:, -1].set(True)

    params = init_params(kp, emb_dim, mlp_factor)

    out = transformer_decoder_layer(
        params, tgt, memory, pos_emb, memory_pos_emb,
        memory_mask, memory_key_padding_mask,
        num_heads=num_heads, layer_norm_eps=1e-5, norm_first=True)
    out = jax.block_until_ready(out)

    assert out.shape == (L, N, emb_dim)
    assert bool(jnp.all(jnp.isfinite(out)))

    ref = reference_forward(
        params, tgt, memory, pos_emb, memory_pos_emb,
        memory_mask, memory_key_padding_mask,
        num_heads=num_heads, layer_norm_eps=1e-5, norm_first=True)
    err = float(jnp.max(jnp.abs(out - ref)))
    # kernel feeds the MXU bf16 (f32 accumulate) -> slightly looser tolerance vs f32 ref
    assert jnp.allclose(out, ref, atol=2e-2, rtol=2e-2), err

    print("KERNEL_OK")
</pallas_src>

<mosaic_0001>
module attributes {stable_mosaic.version = 11 : i64} {
  func.func @_decoder_layer_kernel(%arg0: i32, %arg1: i32, %arg2: memref<1x8x32xf32, #tpu.memory_space<vmem>>, %arg3: memref<1x8x32xf32, #tpu.memory_space<vmem>>, %arg4: memref<1x8x32xf32, #tpu.memory_space<vmem>>, %arg5: memref<1x8x32xf32, #tpu.memory_space<vmem>>, %arg6: memref<8x8xf32, #tpu.memory_space<vmem>>, %arg7: memref<1x1x8xf32, #tpu.memory_space<vmem>>, %arg8: memref<32x32xbf16, #tpu.memory_space<vmem>>, %arg9: memref<1x32xf32, #tpu.memory_space<vmem>>, %arg10: memref<32x32xbf16, #tpu.memory_space<vmem>>, %arg11: memref<1x32xf32, #tpu.memory_space<vmem>>, %arg12: memref<32x32xbf16, #tpu.memory_space<vmem>>, %arg13: memref<1x32xf32, #tpu.memory_space<vmem>>, %arg14: memref<4x8x32xbf16, #tpu.memory_space<vmem>>, %arg15: memref<1x32xf32, #tpu.memory_space<vmem>>, %arg16: memref<1x32xf32, #tpu.memory_space<vmem>>, %arg17: memref<1x32xf32, #tpu.memory_space<vmem>>, %arg18: memref<1x32xf32, #tpu.memory_space<vmem>>, %arg19: memref<1x32xf32, #tpu.memory_space<vmem>>, %arg20: memref<32x128xbf16, #tpu.memory_space<vmem>>, %arg21: memref<1x128xf32, #tpu.memory_space<vmem>>, %arg22: memref<128x32xbf16, #tpu.memory_space<vmem>>, %arg23: memref<1x32xf32, #tpu.memory_space<vmem>>, %arg24: memref<1x8x32xf32, #tpu.memory_space<vmem>>, %arg25: memref<8x32xbf16, #tpu.memory_space<vmem>>, %arg26: memref<8x32xbf16, #tpu.memory_space<vmem>>) attributes {dimension_semantics = [#tpu.dimension_semantics<parallel>, #tpu.dimension_semantics<arbitrary>], iteration_bounds = array<i64: 2, 1>, scalar_prefetch = 0 : i64, scratch_operands = 2 : i64, tpu.core_type = #tpu.core_type<tc>, window_params = [{transform_indices = @transform_0, window_bounds = array<i64: 1, 8, 32>}, {transform_indices = @transform_1, window_bounds = array<i64: 1, 8, 32>}, {transform_indices = @transform_2, window_bounds = array<i64: 1, 8, 32>}, {transform_indices = @transform_3, window_bounds = array<i64: 1, 8, 32>}, {transform_indices = @transform_4, window_bounds = array<i64: 8, 8>}, {transform_indices = @transform_5, window_bounds = array<i64: 1, 1, 8>}, {pipeline_mode = #tpu.pipeline_mode<synchronous>, transform_indices = @transform_6, window_bounds = array<i64: 32, 32>}, {pipeline_mode = #tpu.pipeline_mode<synchronous>, transform_indices = @transform_7, window_bounds = array<i64: 1, 32>}, {pipeline_mode = #tpu.pipeline_mode<synchronous>, transform_indices = @transform_8, window_bounds = array<i64: 32, 32>}, {pipeline_mode = #tpu.pipeline_mode<synchronous>, transform_indices = @transform_9, window_bounds = array<i64: 1, 32>}, {pipeline_mode = #tpu.pipeline_mode<synchronous>, transform_indices = @transform_10, window_bounds = array<i64: 32, 32>}, {pipeline_mode = #tpu.pipeline_mode<synchronous>, transform_indices = @transform_11, window_bounds = array<i64: 1, 32>}, {pipeline_mode = #tpu.pipeline_mode<synchronous>, transform_indices = @transform_12, window_bounds = array<i64: 4, 8, 32>}, {pipeline_mode = #tpu.pipeline_mode<synchronous>, transform_indices = @transform_13, window_bounds = array<i64: 1, 32>}, {pipeline_mode = #tpu.pipeline_mode<synchronous>, transform_indices = @transform_14, window_bounds = array<i64: 1, 32>}, {pipeline_mode = #tpu.pipeline_mode<synchronous>, transform_indices = @transform_15, window_bounds = array<i64: 1, 32>}, {pipeline_mode = #tpu.pipeline_mode<synchronous>, transform_indices = @transform_16, window_bounds = array<i64: 1, 32>}, {pipeline_mode = #tpu.pipeline_mode<synchronous>, transform_indices = @transform_17, window_bounds = array<i64: 1, 32>}, {pipeline_mode = #tpu.pipeline_mode<synchronous>, transform_indices = @transform_18, window_bounds = array<i64: 32, 128>}, {pipeline_mode = #tpu.pipeline_mode<synchronous>, transform_indices = @transform_19, window_bounds = array<i64: 1, 128>}, {pipeline_mode = #tpu.pipeline_mode<synchronous>, transform_indices = @transform_20, window_bounds = array<i64: 128, 32>}, {pipeline_mode = #tpu.pipeline_mode<synchronous>, transform_indices = @transform_21, window_bounds = array<i64: 1, 32>}, {transform_indices = @transform_22, window_bounds = array<i64: 1, 8, 32>}]} {
    %c0_i32 = arith.constant 0 : i32
    %0 = arith.cmpi eq, %arg1, %c0_i32 : i32
    %1 = arith.extui %0 : i1 to i32
    %c0_i32_0 = arith.constant 0 : i32
    %2 = arith.cmpi ne, %1, %c0_i32_0 : i32
    scf.if %2 {
      %c0_83 = arith.constant 0 : index
      %c0_84 = arith.constant 0 : index
      %c0_85 = arith.constant 0 : index
      %181 = vector.load %arg4[%c0_83, %c0_84, %c0_85] : memref<1x8x32xf32, #tpu.memory_space<vmem>>, vector<1x8x32xf32>
      %182 = vector.shape_cast %181 : vector<1x8x32xf32> to vector<8x32xf32>
      %c0_86 = arith.constant 0 : index
      %c0_87 = arith.constant 0 : index
      %c0_88 = arith.constant 0 : index
      %183 = vector.load %arg5[%c0_86, %c0_87, %c0_88] : memref<1x8x32xf32, #tpu.memory_space<vmem>>, vector<1x8x32xf32>
      %184 = vector.shape_cast %183 : vector<1x8x32xf32> to vector<8x32xf32>
      %185 = arith.addf %182, %184 : vector<8x32xf32>
      %186 = arith.truncf %185 : vector<8x32xf32> to vector<8x32xbf16>
      %c0_89 = arith.constant 0 : index
      %c0_90 = arith.constant 0 : index
      %187 = vector.load %arg10[%c0_89, %c0_90] : memref<32x32xbf16, #tpu.memory_space<vmem>>, vector<32x32xbf16>
      %cst_91 = arith.constant dense<0.000000e+00> : vector<8x32xf32>
      %188 = tpu.matmul %186, %187, %cst_91 {dimension_numbers = #tpu.dot_dimension_numbers<[1], [0], [0], [1], [0, 0, 1, 1], [], []>} : vector<8x32xbf16>, vector<32x32xbf16>, vector<8x32xf32> -> vector<8x32xf32>
      %c0_92 = arith.constant 0 : index
      %c0_93 = arith.constant 0 : index
      %189 = vector.load %arg11[%c0_92, %c0_93] : memref<1x32xf32, #tpu.memory_space<vmem>>, vector<1x32xf32>
      %190 = vector.broadcast %189 : vector<1x32xf32> to vector<8x32xf32>
      %191 = arith.addf %188, %190 : vector<8x32xf32>
      %192 = arith.truncf %191 : vector<8x32xf32> to vector<8x32xbf16>
      %c0_94 = arith.constant 0 : index
      %c0_95 = arith.constant 0 : index
      %193 = vector.load %arg25[%c0_94, %c0_95] : memref<8x32xbf16, #tpu.memory_space<vmem>>, vector<8x32xbf16>
      tpu.vector_store %arg25[%c0_94, %c0_95], %192 {strides = array<i32>} : memref<8x32xbf16, #tpu.memory_space<vmem>>, vector<8x32xbf16>,
      %194 = arith.truncf %182 : vector<8x32xf32> to vector<8x32xbf16>
      %c0_96 = arith.constant 0 : index
      %c0_97 = arith.constant 0 : index
      %195 = vector.load %arg12[%c0_96, %c0_97] : memref<32x32xbf16, #tpu.memory_space<vmem>>, vector<32x32xbf16>
      %cst_98 = arith.constant dense<0.000000e+00> : vector<8x32xf32>
      %196 = tpu.matmul %194, %195, %cst_98 {dimension_numbers = #tpu.dot_dimension_numbers<[1], [0], [0], [1], [0, 0, 1, 1], [], []>} : vector<8x32xbf16>, vector<32x32xbf16>, vector<8x32xf32> -> vector<8x32xf32>
      %c0_99 = arith.constant 0 : index
      %c0_100 = arith.constant 0 : index
      %197 = vector.load %arg13[%c0_99, %c0_100] : memref<1x32xf32, #tpu.memory_space<vmem>>, vector<1x32xf32>
      %198 = vector.broadcast %197 : vector<1x32xf32> to vector<8x32xf32>
      %199 = arith.addf %196, %198 : vector<8x32xf32>
      %200 = arith.truncf %199 : vector<8x32xf32> to vector<8x32xbf16>
      %c0_101 = arith.constant 0 : index
      %c0_102 = arith.constant 0 : index
      %201 = vector.load %arg26[%c0_101, %c0_102] : memref<8x32xbf16, #tpu.memory_space<vmem>>, vector<8x32xbf16>
      tpu.vector_store %arg26[%c0_101, %c0_102], %200 {strides = array<i32>} : memref<8x32xbf16, #tpu.memory_space<vmem>>, vector<8x32xbf16>,
    } else {
    }
    %c0 = arith.constant 0 : index
    %c0_1 = arith.constant 0 : index
    %c0_2 = arith.constant 0 : index
    %3 = vector.load %arg2[%c0, %c0_1, %c0_2] : memref<1x8x32xf32, #tpu.memory_space<vmem>>, vector<1x8x32xf32>
    %4 = vector.shape_cast %3 : vector<1x8x32xf32> to vector<8x32xf32>
    %cst = arith.constant dense<0.000000e+00> : vector<8xf32>
    %5 = vector.multi_reduction <add>, %4, %cst [1] : vector<8x32xf32> to vector<8xf32>
    %6 = vector.shape_cast %5 : vector<8xf32> to vector<8x1xf32>
    %cst_3 = arith.constant 3.200000e+01 : f32
    %7 = vector.broadcast %cst_3 : f32 to vector<8x1xf32>
    %8 = arith.divf %6, %7 : vector<8x1xf32>
    %9 = arith.mulf %4, %4 : vector<8x32xf32>
    %cst_4 = arith.constant dense<0.000000e+00> : vector<8xf32>
    %10 = vector.multi_reduction <add>, %9, %cst_4 [1] : vector<8x32xf32> to vector<8xf32>
    %11 = vector.shape_cast %10 : vector<8xf32> to vector<8x1xf32>
    %cst_5 = arith.constant 3.200000e+01 : f32
    %12 = vector.broadcast %cst_5 : f32 to vector<8x1xf32>
    %13 = arith.divf %11, %12 : vector<8x1xf32>
    %14 = arith.mulf %8, %8 : vector<8x1xf32>
    %15 = arith.subf %13, %14 : vector<8x1xf32>
    %16 = vector.broadcast %8 : vector<8x1xf32> to vector<8x32xf32>
    %17 = arith.subf %4, %16 : vector<8x32xf32>
    %cst_6 = arith.constant 9.99999974E-6 : f32
    %18 = vector.broadcast %cst_6 : f32 to vector<8x1xf32>
    %19 = arith.addf %15, %18 : vector<8x1xf32>
    %20 = math.rsqrt %19 : vector<8x1xf32>
    %21 = vector.broadcast %20 : vector<8x1xf32> to vector<8x32xf32>
    %22 = arith.mulf %17, %21 : vector<8x32xf32>
    %c0_7 = arith.constant 0 : index
    %c0_8 = arith.constant 0 : index
    %23 = vector.load %arg16[%c0_7, %c0_8] : memref<1x32xf32, #tpu.memory_space<vmem>>, vector<1x32xf32>
    %24 = vector.broadcast %23 : vector<1x32xf32> to vector<8x32xf32>
    %25 = arith.mulf %22, %24 : vector<8x32xf32>
    %c0_9 = arith.constant 0 : index
    %c0_10 = arith.constant 0 : index
    %26 = vector.load %arg17[%c0_9, %c0_10] : memref<1x32xf32, #tpu.memory_space<vmem>>, vector<1x32xf32>
    %27 = vector.broadcast %26 : vector<1x32xf32> to vector<8x32xf32>
    %28 = arith.addf %25, %27 : vector<8x32xf32>
    %c0_11 = arith.constant 0 : index
    %c0_12 = arith.constant 0 : index
    %c0_13 = arith.constant 0 : index
    %29 = vector.load %arg3[%c0_11, %c0_12, %c0_13] : memref<1x8x32xf32, #tpu.memory_space<vmem>>, vector<1x8x32xf32>
    %30 = vector.shape_cast %29 : vector<1x8x32xf32> to vector<8x32xf32>
    %31 = arith.addf %28, %30 : vector<8x32xf32>
    %32 = arith.truncf %31 : vector<8x32xf32> to vector<8x32xbf16>
    %c0_14 = arith.constant 0 : index
    %c0_15 = arith.constant 0 : index
    %33 = vector.load %arg8[%c0_14, %c0_15] : memref<32x32xbf16, #tpu.memory_space<vmem>>, vector<32x32xbf16>
    %cst_16 = arith.constant dense<0.000000e+00> : vector<8x32xf32>
    %34 = tpu.matmul %32, %33, %cst_16 {dimension_numbers = #tpu.dot_dimension_numbers<[1], [0], [0], [1], [0, 0, 1, 1], [], []>} : vector<8x32xbf16>, vector<32x32xbf16>, vector<8x32xf32> -> vector<8x32xf32>
    %c0_17 = arith.constant 0 : index
    %c0_18 = arith.constant 0 : index
    %35 = vector.load %arg9[%c0_17, %c0_18] : memref<1x32xf32, #tpu.memory_space<vmem>>, vector<1x32xf32>
    %36 = vector.broadcast %35 : vector<1x32xf32> to vector<8x32xf32>
    %37 = arith.addf %34, %36 : vector<8x32xf32>
    %38 = arith.truncf %37 : vector<8x32xf32> to vector<8x32xbf16>
    %c0_19 = arith.constant 0 : index
    %c0_20 = arith.constant 0 : index
    %39 = vector.load %arg6[%c0_19, %c0_20] : memref<8x8xf32, #tpu.memory_space<vmem>>, vector<8x8xf32>
    %c0_21 = arith.constant 0 : index
    %c0_22 = arith.constant 0 : index
    %c0_23 = arith.constant 0 : index
    %40 = vector.load %arg7[%c0_21, %c0_22, %c0_23] : memref<1x1x8xf32, #tpu.memory_space<vmem>>, vector<1x1x8xf32>
    %41 = vector.shape_cast %40 : vector<1x1x8xf32> to vector<1x8xf32>
    %42 = vector.broadcast %41 : vector<1x8xf32> to vector<8x8xf32>
    %43 = arith.addf %39, %42 : vector<8x8xf32>
    %c0_24 = arith.constant 0 : index
    %c0_25 = arith.constant 0 : index
    %44 = vector.load %arg25[%c0_24, %c0_25] : memref<8x32xbf16, #tpu.memory_space<vmem>>, vector<8x32xbf16>
    %c0_26 = arith.constant 0 : index
    %c0_27 = arith.constant 0 : index
    %45 = vector.load %arg26[%c0_26, %c0_27] : memref<8x32xbf16, #tpu.memory_space<vmem>>, vector<8x32xbf16>
    %cst_28 = arith.constant 0.000000e+00 : f32
    %46 = vector.broadcast %cst_28 : f32 to vector<8x32xf32>
    %47 = vector.extract_strided_slice %38 {offsets = [0, 0], sizes = [8, 8], strides = [1, 1]} : vector<8x32xbf16> to vector<8x8xbf16>
    %48 = vector.extract_strided_slice %44 {offsets = [0, 0], sizes = [8, 8], strides = [1, 1]} : vector<8x32xbf16> to vector<8x8xbf16>
    %49 = vector.extract_strided_slice %45 {offsets = [0, 0], sizes = [8, 8], strides = [1, 1]} : vector<8x32xbf16> to vector<8x8xbf16>
    %cst_29 = arith.constant dense<0.000000e+00> : vector<8x8xf32>
    %50 = tpu.matmul %47, %48, %cst_29 {dimension_numbers = #tpu.dot_dimension_numbers<[1], [1], [0], [0], [0, 0, 1, 0], [], []>} : vector<8x8xbf16>, vector<8x8xbf16>, vector<8x8xf32> -> vector<8x8xf32>
    %51 = arith.addf %50, %43 : vector<8x8xf32>
    %cst_30 = arith.constant dense<0xFF800000> : vector<8xf32>
    %52 = vector.multi_reduction <maximumf>, %51, %cst_30 [1] : vector<8x8xf32> to vector<8xf32>
    %53 = vector.shape_cast %52 : vector<8xf32> to vector<8x1xf32>
    %54 = vector.broadcast %53 : vector<8x1xf32> to vector<8x8xf32>
    %55 = arith.subf %51, %54 : vector<8x8xf32>
    %56 = math.exp %55 : vector<8x8xf32>
    %cst_31 = arith.constant dense<0.000000e+00> : vector<8xf32>
    %57 = vector.multi_reduction <add>, %56, %cst_31 [1] : vector<8x8xf32> to vector<8xf32>
    %58 = vector.shape_cast %57 : vector<8xf32> to vector<8x1xf32>
    %59 = arith.truncf %56 : vector<8x8xf32> to vector<8x8xbf16>
    %cst_32 = arith.constant dense<0.000000e+00> : vector<8x8xf32>
    %60 = tpu.matmul %59, %49, %cst_32 {dimension_numbers = #tpu.dot_dimension_numbers<[1], [0], [0], [1], [0, 0, 1, 1], [], []>} : vector<8x8xbf16>, vector<8x8xbf16>, vector<8x8xf32> -> vector<8x8xf32>
    %61 = tpu.reciprocal %58 {approx = true} : vector<8x1xf32> -> vector<8x1xf32>
    %62 = vector.broadcast %61 : vector<8x1xf32> to vector<8x8xf32>
    %63 = arith.mulf %60, %62 : vector<8x8xf32>
    %64 = arith.truncf %63 : vector<8x8xf32> to vector<8x8xbf16>
    %c0_33 = arith.constant 0 : index
    %c0_34 = arith.constant 0 : index
    %c0_35 = arith.constant 0 : index
    %65 = vector.load %arg14[%c0_33, %c0_34, %c0_35] : memref<4x8x32xbf16, #tpu.memory_space<vmem>>, vector<1x8x32xbf16>
    %66 = vector.shape_cast %65 : vector<1x8x32xbf16> to vector<8x32xbf16>
    %cst_36 = arith.constant dense<0.000000e+00> : vector<8x32xf32>
    %67 = tpu.matmul %64, %66, %cst_36 {dimension_numbers = #tpu.dot_dimension_numbers<[1], [0], [0], [1], [0, 0, 1, 1], [], []>} : vector<8x8xbf16>, vector<8x32xbf16>, vector<8x32xf32> -> vector<8x32xf32>
    %68 = arith.addf %46, %67 : vector<8x32xf32>
    %69 = vector.extract_strided_slice %38 {offsets = [0, 8], sizes = [8, 8], strides = [1, 1]} : vector<8x32xbf16> to vector<8x8xbf16>
    %70 = vector.extract_strided_slice %44 {offsets = [0, 8], sizes = [8, 8], strides = [1, 1]} : vector<8x32xbf16> to vector<8x8xbf16>
    %71 = vector.extract_strided_slice %45 {offsets = [0, 8], sizes = [8, 8], strides = [1, 1]} : vector<8x32xbf16> to vector<8x8xbf16>
    %cst_37 = arith.constant dense<0.000000e+00> : vector<8x8xf32>
    %72 = tpu.matmul %69, %70, %cst_37 {dimension_numbers = #tpu.dot_dimension_numbers<[1], [1], [0], [0], [0, 0, 1, 0], [], []>} : vector<8x8xbf16>, vector<8x8xbf16>, vector<8x8xf32> -> vector<8x8xf32>
    %73 = arith.addf %72, %43 : vector<8x8xf32>
    %cst_38 = arith.constant dense<0xFF800000> : vector<8xf32>
    %74 = vector.multi_reduction <maximumf>, %73, %cst_38 [1] : vector<8x8xf32> to vector<8xf32>
    %75 = vector.shape_cast %74 : vector<8xf32> to vector<8x1xf32>
    %76 = vector.broadcast %75 : vector<8x1xf32> to vector<8x8xf32>
    %77 = arith.subf %73, %76 : vector<8x8xf32>
    %78 = math.exp %77 : vector<8x8xf32>
    %cst_39 = arith.constant dense<0.000000e+00> : vector<8xf32>
    %79 = vector.multi_reduction <add>, %78, %cst_39 [1] : vector<8x8xf32> to vector<8xf32>
    %80 = vector.shape_cast %79 : vector<8xf32> to vector<8x1xf32>
    %81 = arith.truncf %78 : vector<8x8xf32> to vector<8x8xbf16>
    %cst_40 = arith.constant dense<0.000000e+00> : vector<8x8xf32>
    %82 = tpu.matmul %81, %71, %cst_40 {dimension_numbers = #tpu.dot_dimension_numbers<[1], [0], [0], [1], [0, 0, 1, 1], [], []>} : vector<8x8xbf16>, vector<8x8xbf16>, vector<8x8xf32> -> vector<8x8xf32>
    %83 = tpu.reciprocal %80 {approx = true} : vector<8x1xf32> -> vector<8x1xf32>
    %84 = vector.broadcast %83 : vector<8x1xf32> to vector<8x8xf32>
    %85 = arith.mulf %82, %84 : vector<8x8xf32>
    %86 = arith.truncf %85 : vector<8x8xf32> to vector<8x8xbf16>
    %c1 = arith.constant 1 : index
    %c0_41 = arith.constant 0 : index
    %c0_42 = arith.constant 0 : index
    %87 = vector.load %arg14[%c1, %c0_41, %c0_42] : memref<4x8x32xbf16, #tpu.memory_space<vmem>>, vector<1x8x32xbf16>
    %88 = vector.shape_cast %87 : vector<1x8x32xbf16> to vector<8x32xbf16>
    %cst_43 = arith.constant dense<0.000000e+00> : vector<8x32xf32>
    %89 = tpu.matmul %86, %88, %cst_43 {dimension_numbers = #tpu.dot_dimension_numbers<[1], [0], [0], [1], [0, 0, 1, 1], [], []>} : vector<8x8xbf16>, vector<8x32xbf16>, vector<8x32xf32> -> vector<8x32xf32>
    %90 = arith.addf %68, %89 : vector<8x32xf32>
    %91 = vector.extract_strided_slice %38 {offsets = [0, 16], sizes = [8, 8], strides = [1, 1]} : vector<8x32xbf16> to vector<8x8xbf16>
    %92 = vector.extract_strided_slice %44 {offsets = [0, 16], sizes = [8, 8], strides = [1, 1]} : vector<8x32xbf16> to vector<8x8xbf16>
    %93 = vector.extract_strided_slice %45 {offsets = [0, 16], sizes = [8, 8], strides = [1, 1]} : vector<8x32xbf16> to vector<8x8xbf16>
    %cst_44 = arith.constant dense<0.000000e+00> : vector<8x8xf32>
    %94 = tpu.matmul %91, %92, %cst_44 {dimension_numbers = #tpu.dot_dimension_numbers<[1], [1], [0], [0], [0, 0, 1, 0], [], []>} : vector<8x8xbf16>, vector<8x8xbf16>, vector<8x8xf32> -> vector<8x8xf32>
    %95 = arith.addf %94, %43 : vector<8x8xf32>
    %cst_45 = arith.constant dense<0xFF800000> : vector<8xf32>
    %96 = vector.multi_reduction <maximumf>, %95, %cst_45 [1] : vector<8x8xf32> to vector<8xf32>
    %97 = vector.shape_cast %96 : vector<8xf32> to vector<8x1xf32>
    %98 = vector.broadcast %97 : vector<8x1xf32> to vector<8x8xf32>
    %99 = arith.subf %95, %98 : vector<8x8xf32>
    %100 = math.exp %99 : vector<8x8xf32>
    %cst_46 = arith.constant dense<0.000000e+00> : vector<8xf32>
    %101 = vector.multi_reduction <add>, %100, %cst_46 [1] : vector<8x8xf32> to vector<8xf32>
    %102 = vector.shape_cast %101 : vector<8xf32> to vector<8x1xf32>
    %103 = arith.truncf %100 : vector<8x8xf32> to vector<8x8xbf16>
    %cst_47 = arith.constant dense<0.000000e+00> : vector<8x8xf32>
    %104 = tpu.matmul %103, %93, %cst_47 {dimension_numbers = #tpu.dot_dimension_numbers<[1], [0], [0], [1], [0, 0, 1, 1], [], []>} : vector<8x8xbf16>, vector<8x8xbf16>, vector<8x8xf32> -> vector<8x8xf32>
    %105 = tpu.reciprocal %102 {approx = true} : vector<8x1xf32> -> vector<8x1xf32>
    %106 = vector.broadcast %105 : vector<8x1xf32> to vector<8x8xf32>
    %107 = arith.mulf %104, %106 : vector<8x8xf32>
    %108 = arith.truncf %107 : vector<8x8xf32> to vector<8x8xbf16>
    %c2 = arith.constant 2 : index
    %c0_48 = arith.constant 0 : index
    %c0_49 = arith.constant 0 : index
    %109 = vector.load %arg14[%c2, %c0_48, %c0_49] : memref<4x8x32xbf16, #tpu.memory_space<vmem>>, vector<1x8x32xbf16>
    %110 = vector.shape_cast %109 : vector<1x8x32xbf16> to vector<8x32xbf16>
    %cst_50 = arith.constant dense<0.000000e+00> : vector<8x32xf32>
    %111 = tpu.matmul %108, %110, %cst_50 {dimension_numbers = #tpu.dot_dimension_numbers<[1], [0], [0], [1], [0, 0, 1, 1], [], []>} : vector<8x8xbf16>, vector<8x32xbf16>, vector<8x32xf32> -> vector<8x32xf32>
    %112 = arith.addf %90, %111 : vector<8x32xf32>
    %113 = vector.extract_strided_slice %38 {offsets = [0, 24], sizes = [8, 8], strides = [1, 1]} : vector<8x32xbf16> to vector<8x8xbf16>
    %114 = vector.extract_strided_slice %44 {offsets = [0, 24], sizes = [8, 8], strides = [1, 1]} : vector<8x32xbf16> to vector<8x8xbf16>
    %115 = vector.extract_strided_slice %45 {offsets = [0, 24], sizes = [8, 8], strides = [1, 1]} : vector<8x32xbf16> to vector<8x8xbf16>
    %cst_51 = arith.constant dense<0.000000e+00> : vector<8x8xf32>
    %116 = tpu.matmul %113, %114, %cst_51 {dimension_numbers = #tpu.dot_dimension_numbers<[1], [1], [0], [0], [0, 0, 1, 0], [], []>} : vector<8x8xbf16>, vector<8x8xbf16>, vector<8x8xf32> -> vector<8x8xf32>
    %117 = arith.addf %116, %43 : vector<8x8xf32>
    %cst_52 = arith.constant dense<0xFF800000> : vector<8xf32>
    %118 = vector.multi_reduction <maximumf>, %117, %cst_52 [1] : vector<8x8xf32> to vector<8xf32>
    %119 = vector.shape_cast %118 : vector<8xf32> to vector<8x1xf32>
    %120 = vector.broadcast %119 : vector<8x1xf32> to vector<8x8xf32>
    %121 = arith.subf %117, %120 : vector<8x8xf32>
    %122 = math.exp %121 : vector<8x8xf32>
    %cst_53 = arith.constant dense<0.000000e+00> : vector<8xf32>
    %123 = vector.multi_reduction <add>, %122, %cst_53 [1] : vector<8x8xf32> to vector<8xf32>
    %124 = vector.shape_cast %123 : vector<8xf32> to vector<8x1xf32>
    %125 = arith.truncf %122 : vector<8x8xf32> to vector<8x8xbf16>
    %cst_54 = arith.constant dense<0.000000e+00> : vector<8x8xf32>
    %126 = tpu.matmul %125, %115, %cst_54 {dimension_numbers = #tpu.dot_dimension_numbers<[1], [0], [0], [1], [0, 0, 1, 1], [], []>} : vector<8x8xbf16>, vector<8x8xbf16>, vector<8x8xf32> -> vector<8x8xf32>
    %127 = tpu.reciprocal %124 {approx = true} : vector<8x1xf32> -> vector<8x1xf32>
    %128 = vector.broadcast %127 : vector<8x1xf32> to vector<8x8xf32>
    %129 = arith.mulf %126, %128 : vector<8x8xf32>
    %130 = arith.truncf %129 : vector<8x8xf32> to vector<8x8xbf16>
    %c3 = arith.constant 3 : index
    %c0_55 = arith.constant 0 : index
    %c0_56 = arith.constant 0 : index
    %131 = vector.load %arg14[%c3, %c0_55, %c0_56] : memref<4x8x32xbf16, #tpu.memory_space<vmem>>, vector<1x8x32xbf16>
    %132 = vector.shape_cast %131 : vector<1x8x32xbf16> to vector<8x32xbf16>
    %cst_57 = arith.constant dense<0.000000e+00> : vector<8x32xf32>
    %133 = tpu.matmul %130, %132, %cst_57 {dimension_numbers = #tpu.dot_dimension_numbers<[1], [0], [0], [1], [0, 0, 1, 1], [], []>} : vector<8x8xbf16>, vector<8x32xbf16>, vector<8x32xf32> -> vector<8x32xf32>
    %134 = arith.addf %112, %133 : vector<8x32xf32>
    %135 = arith.addf %28, %134 : vector<8x32xf32>
    %c0_58 = arith.constant 0 : index
    %c0_59 = arith.constant 0 : index
    %136 = vector.load %arg15[%c0_58, %c0_59] : memref<1x32xf32, #tpu.memory_space<vmem>>, vector<1x32xf32>
    %137 = vector.broadcast %136 : vector<1x32xf32> to vector<8x32xf32>
    %138 = arith.addf %135, %137 : vector<8x32xf32>
    %cst_60 = arith.constant dense<0.000000e+00> : vector<8xf32>
    %139 = vector.multi_reduction <add>, %138, %cst_60 [1] : vector<8x32xf32> to vector<8xf32>
    %140 = vector.shape_cast %139 : vector<8xf32> to vector<8x1xf32>
    %cst_61 = arith.constant 3.200000e+01 : f32
    %141 = vector.broadcast %cst_61 : f32 to vector<8x1xf32>
    %142 = arith.divf %140, %141 : vector<8x1xf32>
    %143 = arith.mulf %138, %138 : vector<8x32xf32>
    %cst_62 = arith.constant dense<0.000000e+00> : vector<8xf32>
    %144 = vector.multi_reduction <add>, %143, %cst_62 [1] : vector<8x32xf32> to vector<8xf32>
    %145 = vector.shape_cast %144 : vector<8xf32> to vector<8x1xf32>
    %cst_63 = arith.constant 3.200000e+01 : f32
    %146 = vector.broadcast %cst_63 : f32 to vector<8x1xf32>
    %147 = arith.divf %145, %146 : vector<8x1xf32>
    %148 = arith.mulf %142, %142 : vector<8x1xf32>
    %149 = arith.subf %147, %148 : vector<8x1xf32>
    %150 = vector.broadcast %142 : vector<8x1xf32> to vector<8x32xf32>
    %151 = arith.subf %138, %150 : vector<8x32xf32>
    %cst_64 = arith.constant 9.99999974E-6 : f32
    %152 = vector.broadcast %cst_64 : f32 to vector<8x1xf32>
    %153 = arith.addf %149, %152 : vector<8x1xf32>
    %154 = math.rsqrt %153 : vector<8x1xf32>
    %155 = vector.broadcast %154 : vector<8x1xf32> to vector<8x32xf32>
    %156 = arith.mulf %151, %155 : vector<8x32xf32>
    %c0_65 = arith.constant 0 : index
    %c0_66 = arith.constant 0 : index
    %157 = vector.load %arg18[%c0_65, %c0_66] : memref<1x32xf32, #tpu.memory_space<vmem>>, vector<1x32xf32>
    %158 = vector.broadcast %157 : vector<1x32xf32> to vector<8x32xf32>
    %159 = arith.mulf %156, %158 : vector<8x32xf32>
    %c0_67 = arith.constant 0 : index
    %c0_68 = arith.constant 0 : index
    %160 = vector.load %arg19[%c0_67, %c0_68] : memref<1x32xf32, #tpu.memory_space<vmem>>, vector<1x32xf32>
    %161 = vector.broadcast %160 : vector<1x32xf32> to vector<8x32xf32>
    %162 = arith.addf %159, %161 : vector<8x32xf32>
    %163 = arith.truncf %162 : vector<8x32xf32> to vector<8x32xbf16>
    %c0_69 = arith.constant 0 : index
    %c0_70 = arith.constant 0 : index
    %164 = vector.load %arg20[%c0_69, %c0_70] : memref<32x128xbf16, #tpu.memory_space<vmem>>, vector<32x128xbf16>
    %cst_71 = arith.constant dense<0.000000e+00> : vector<8x128xf32>
    %165 = tpu.matmul %163, %164, %cst_71 {dimension_numbers = #tpu.dot_dimension_numbers<[1], [0], [0], [1], [0, 0, 1, 1], [], []>} : vector<8x32xbf16>, vector<32x128xbf16>, vector<8x128xf32> -> vector<8x128xf32>
    %c0_72 = arith.constant 0 : index
    %c0_73 = arith.constant 0 : index
    %166 = vector.load %arg21[%c0_72, %c0_73] : memref<1x128xf32, #tpu.memory_space<vmem>>, vector<1x128xf32>
    %167 = vector.broadcast %166 : vector<1x128xf32> to vector<8x128xf32>
    %168 = arith.addf %165, %167 : vector<8x128xf32>
    %cst_74 = arith.constant 0.000000e+00 : f32
    %169 = vector.broadcast %cst_74 : f32 to vector<8x128xf32>
    %170 = arith.maximumf %168, %169 : vector<8x128xf32>
    %171 = arith.truncf %170 : vector<8x128xf32> to vector<8x128xbf16>
    %c0_75 = arith.constant 0 : index
    %c0_76 = arith.constant 0 : index
    %172 = vector.load %arg22[%c0_75, %c0_76] : memref<128x32xbf16, #tpu.memory_space<vmem>>, vector<128x32xbf16>
    %cst_77 = arith.constant dense<0.000000e+00> : vector<8x32xf32>
    %173 = tpu.matmul %171, %172, %cst_77 {dimension_numbers = #tpu.dot_dimension_numbers<[1], [0], [0], [1], [0, 0, 1, 1], [], []>} : vector<8x128xbf16>, vector<128x32xbf16>, vector<8x32xf32> -> vector<8x32xf32>
    %c0_78 = arith.constant 0 : index
    %c0_79 = arith.constant 0 : index
    %174 = vector.load %arg23[%c0_78, %c0_79] : memref<1x32xf32, #tpu.memory_space<vmem>>, vector<1x32xf32>
    %175 = vector.broadcast %174 : vector<1x32xf32> to vector<8x32xf32>
    %176 = arith.addf %173, %175 : vector<8x32xf32>
    %177 = arith.addf %138, %176 : vector<8x32xf32>
    %c0_80 = arith.constant 0 : index
    %c0_81 = arith.constant 0 : index
    %c0_82 = arith.constant 0 : index
    %178 = vector.load %arg24[%c0_80, %c0_81, %c0_82] : memref<1x8x32xf32, #tpu.memory_space<vmem>>, vector<1x8x32xf32>
    %179 = vector.shape_cast %178 : vector<1x8x32xf32> to vector<8x32xf32>
    %180 = vector.shape_cast %177 : vector<8x32xf32> to vector<1x8x32xf32>
    tpu.vector_store %arg24[%c0_80, %c0_81, %c0_82], %180 {strides = array<i32>} : memref<1x8x32xf32, #tpu.memory_space<vmem>>, vector<1x8x32xf32>,
    return
  }
  func.func @transform_0(%arg0: i32, %arg1: i32) -> (i32, i32, i32) {
    %c0_i32 = arith.constant 0 : i32
    %c0_i32_0 = arith.constant 0 : i32
    return %arg0, %arg1, %c0_i32 : i32, i32, i32
  }
  func.func @transform_1(%arg0: i32, %arg1: i32) -> (i32, i32, i32) {
    %c0_i32 = arith.constant 0 : i32
    %c0_i32_0 = arith.constant 0 : i32
    return %arg0, %arg1, %c0_i32 : i32, i32, i32
  }
  func.func @transform_2(%arg0: i32, %arg1: i32) -> (i32, i32, i32) {
    %c0_i32 = arith.constant 0 : i32
    %c0_i32_0 = arith.constant 0 : i32
    %c0_i32_1 = arith.constant 0 : i32
    return %arg0, %c0_i32, %c0_i32_0 : i32, i32, i32
  }
  func.func @transform_3(%arg0: i32, %arg1: i32) -> (i32, i32, i32) {
    %c0_i32 = arith.constant 0 : i32
    %c0_i32_0 = arith.constant 0 : i32
    %c0_i32_1 = arith.constant 0 : i32
    return %arg0, %c0_i32, %c0_i32_0 : i32, i32, i32
  }
  func.func @transform_4(%arg0: i32, %arg1: i32) -> (i32, i32) {
    %c0_i32 = arith.constant 0 : i32
    %c0_i32_0 = arith.constant 0 : i32
    return %arg1, %c0_i32 : i32, i32
  }
  func.func @transform_5(%arg0: i32, %arg1: i32) -> (i32, i32, i32) {
    %c0_i32 = arith.constant 0 : i32
    %c0_i32_0 = arith.constant 0 : i32
    %c0_i32_1 = arith.constant 0 : i32
    return %arg0, %c0_i32, %c0_i32_0 : i32, i32, i32
  }
  func.func @transform_6(%arg0: i32, %arg1: i32) -> (i32, i32) {
    %c0_i32 = arith.constant 0 : i32
    %c0_i32_0 = arith.constant 0 : i32
    %c0_i32_1 = arith.constant 0 : i32
    return %c0_i32, %c0_i32_0 : i32, i32
  }
  func.func @transform_7(%arg0: i32, %arg1: i32) -> (i32, i32) {
    %c0_i32 = arith.constant 0 : i32
    %c0_i32_0 = arith.constant 0 : i32
    %c0_i32_1 = arith.constant 0 : i32
    return %c0_i32, %c0_i32_0 : i32, i32
  }
  func.func @transform_8(%arg0: i32, %arg1: i32) -> (i32, i32) {
    %c0_i32 = arith.constant 0 : i32
    %c0_i32_0 = arith.constant 0 : i32
    %c0_i32_1 = arith.constant 0 : i32
    return %c0_i32, %c0_i32_0 : i32, i32
  }
  func.func @transform_9(%arg0: i32, %arg1: i32) -> (i32, i32) {
    %c0_i32 = arith.constant 0 : i32
    %c0_i32_0 = arith.constant 0 : i32
    %c0_i32_1 = arith.constant 0 : i32
    return %c0_i32, %c0_i32_0 : i32, i32
  }
  func.func @transform_10(%arg0: i32, %arg1: i32) -> (i32, i32) {
    %c0_i32 = arith.constant 0 : i32
    %c0_i32_0 = arith.constant 0 : i32
    %c0_i32_1 = arith.constant 0 : i32
    return %c0_i32, %c0_i32_0 : i32, i32
  }
  func.func @transform_11(%arg0: i32, %arg1: i32) -> (i32, i32) {
    %c0_i32 = arith.constant 0 : i32
    %c0_i32_0 = arith.constant 0 : i32
    %c0_i32_1 = arith.constant 0 : i32
    return %c0_i32, %c0_i32_0 : i32, i32
  }
  func.func @transform_12(%arg0: i32, %arg1: i32) -> (i32, i32, i32) {
    %c0_i32 = arith.constant 0 : i32
    %c0_i32_0 = arith.constant 0 : i32
    %c0_i32_1 = arith.constant 0 : i32
    %c0_i32_2 = arith.constant 0 : i32
    return %c0_i32, %c0_i32_0, %c0_i32_1 : i32, i32, i32
  }
  func.func @transform_13(%arg0: i32, %arg1: i32) -> (i32, i32) {
    %c0_i32 = arith.constant 0 : i32
    %c0_i32_0 = arith.constant 0 : i32
    %c0_i32_1 = arith.constant 0 : i32
    return %c0_i32, %c0_i32_0 : i32, i32
  }
  func.func @transform_14(%arg0: i32, %arg1: i32) -> (i32, i32) {
    %c0_i32 = arith.constant 0 : i32
    %c0_i32_0 = arith.constant 0 : i32
    %c0_i32_1 = arith.constant 0 : i32
    return %c0_i32, %c0_i32_0 : i32, i32
  }
  func.func @transform_15(%arg0: i32, %arg1: i32) -> (i32, i32) {
    %c0_i32 = arith.constant 0 : i32
    %c0_i32_0 = arith.constant 0 : i32
    %c0_i32_1 = arith.constant 0 : i32
    return %c0_i32, %c0_i32_0 : i32, i32
  }
  func.func @transform_16(%arg0: i32, %arg1: i32) -> (i32, i32) {
    %c0_i32 = arith.constant 0 : i32
    %c0_i32_0 = arith.constant 0 : i32
    %c0_i32_1 = arith.constant 0 : i32
    return %c0_i32, %c0_i32_0 : i32, i32
  }
  func.func @transform_17(%arg0: i32, %arg1: i32) -> (i32, i32) {
    %c0_i32 = arith.constant 0 : i32
    %c0_i32_0 = arith.constant 0 : i32
    %c0_i32_1 = arith.constant 0 : i32
    return %c0_i32, %c0_i32_0 : i32, i32
  }
  func.func @transform_18(%arg0: i32, %arg1: i32) -> (i32, i32) {
    %c0_i32 = arith.constant 0 : i32
    %c0_i32_0 = arith.constant 0 : i32
    %c0_i32_1 = arith.constant 0 : i32
    return %c0_i32, %c0_i32_0 : i32, i32
  }
  func.func @transform_19(%arg0: i32, %arg1: i32) -> (i32, i32) {
    %c0_i32 = arith.constant 0 : i32
    %c0_i32_0 = arith.constant 0 : i32
    %c0_i32_1 = arith.constant 0 : i32
    return %c0_i32, %c0_i32_0 : i32, i32
  }
  func.func @transform_20(%arg0: i32, %arg1: i32) -> (i32, i32) {
    %c0_i32 = arith.constant 0 : i32
    %c0_i32_0 = arith.constant 0 : i32
    %c0_i32_1 = arith.constant 0 : i32
    return %c0_i32, %c0_i32_0 : i32, i32
  }
  func.func @transform_21(%arg0: i32, %arg1: i32) -> (i32, i32) {
    %c0_i32 = arith.constant 0 : i32
    %c0_i32_0 = arith.constant 0 : i32
    %c0_i32_1 = arith.constant 0 : i32
    return %c0_i32, %c0_i32_0 : i32, i32
  }
  func.func @transform_22(%arg0: i32, %arg1: i32) -> (i32, i32, i32) {
    %c0_i32 = arith.constant 0 : i32
    %c0_i32_0 = arith.constant 0 : i32
    return %arg0, %arg1, %c0_i32 : i32, i32, i32
  }
}

</mosaic_0001>

<bundles_post_ra>
// kernel: transformer_decoder_layer.1
= control target key start
LH: loop header
LB: loop body
LE: loop exit
PB: predicated region body
PF: predicated region fallthrough
CT: control target
= control target key end

     0   :  { %s4905_s0 = inlined_call_operand.hbm [shape: f32[2,8,32], index: 0, kind: input, shape index: {}]   ;;  %s4906_s1 = inlined_call_operand.hbm [shape: f32[2,8,32], index: 1, kind: input, shape index: {}]   ;;  %s4907_s2 = inlined_call_operand.hbm [shape: f32[2,8,32], index: 2, kind: input, shape index: {}]   ;;  %s4908_s3 = inlined_call_operand.hbm [shape: f32[2,8,32], index: 3, kind: input, shape index: {}]   ;;  %s4909_s4 = inlined_call_operand.hbm [shape: f32[8,8], index: 4, kind: input, shape index: {}]   ;;  %s4910_s5 = inlined_call_operand.hbm [shape: f32[2,1,8], index: 5, kind: input, shape index: {}]   ;;  %s4911_s6 = inlined_call_operand.hbm [shape: bf16[32,32], index: 6, kind: input, shape index: {}]   ;;  %s4912_s7 = inlined_call_operand.hbm [shape: f32[1,32], index: 7, kind: input, shape index: {}]   ;;  %s4913_s8 = inlined_call_operand.hbm [shape: bf16[32,32], index: 8, kind: input, shape index: {}]   ;;  %s4914_s9 = inlined_call_operand.hbm [shape: f32[1,32], index: 9, kind: input, shape index: {}]   ;;  %s4915_s10 = inlined_call_operand.hbm [shape: bf16[32,32], index: 10, kind: input, shape index: {}]   ;;  %s4916_s11 = inlined_call_operand.hbm [shape: f32[1,32], index: 11, kind: input, shape index: {}]   ;;  %s4917_s12 = inlined_call_operand.hbm [shape: bf16[4,8,32], index: 12, kind: input, shape index: {}]   ;;  %s4918_s13 = inlined_call_operand.hbm [shape: f32[1,32], index: 13, kind: input, shape index: {}]   ;;  %s4919_s14 = inlined_call_operand.hbm [shape: f32[1,32], index: 14, kind: input, shape index: {}]   ;;  %s4920_s15 = inlined_call_operand.hbm [shape: f32[1,32], index: 15, kind: input, shape index: {}]   ;;  %s4921_s16 = inlined_call_operand.hbm [shape: f32[1,32], index: 16, kind: input, shape index: {}]   ;;  %s4922_s17 = inlined_call_operand.hbm [shape: f32[1,32], index: 17, kind: input, shape index: {}]   ;;  %s4923_s18 = inlined_call_operand.hbm [shape: bf16[32,128], index: 18, kind: input, shape index: {}]   ;;  %s4924_s19 = inlined_call_operand.hbm [shape: f32[1,128], index: 19, kind: input, shape index: {}]   ;;  %s4925_s20 = inlined_call_operand.hbm [shape: bf16[128,32], index: 20, kind: input, shape index: {}]   ;;  %s4926_s21 = inlined_call_operand.hbm [shape: f32[1,32], index: 21, kind: input, shape index: {}]   ;;  %s4927_s22 = inlined_call_operand.hbm [shape: f32[2,8,32], index: 22, kind: output, shape index: {}]  }
   0x1   :  { %4971 = sst [smem:[#allocation63_spill]] %s4905_s0 }
   0x2   :  { %4972 = sst [smem:[#allocation64_spill]] %s4906_s1 }
   0x3   :  { %4973 = sst [smem:[#allocation65_spill]] %s4907_s2 }
   0x4   :  { %4974 = sst [smem:[#allocation66_spill]] %s4908_s3 }
   0x5   :  { %4975 = sst [smem:[#allocation67_spill]] %s4909_s4 }
   0x6   :  { %4976 = sst [smem:[#allocation68_spill]] %s4910_s5 }
   0x7   :  { %4977 = sst [smem:[#allocation69_spill]] %s4911_s6 }
   0x8   :  { %4978 = sst [smem:[#allocation70_spill]] %s4912_s7 }
   0x9   :  { %4979 = sst [smem:[#allocation71_spill]] %s4913_s8 }
   0xa   :  { %4980 = sst [smem:[#allocation72_spill]] %s4914_s9 }
   0xb   :  { %4981 = sst [smem:[#allocation73_spill]] %s4915_s10 }
   0xc   :  { %4982 = sst [smem:[#allocation74_spill]] %s4916_s11 }
   0xd   :  { %4983 = sst [smem:[#allocation75_spill]] %s4917_s12 }
   0xe   :  { %4984 = sst [smem:[#allocation76_spill]] %s4918_s13 }
   0xf   :  { %4985 = sst [smem:[#allocation77_spill]] %s4919_s14 }
  0x10   :  { %4986 = sst [smem:[#allocation78_spill]] %s4920_s15 }
  0x11   :  { %4987 = sst [smem:[#allocation79_spill]] %s4921_s16 }
  0x12   :  { %4988 = sst [smem:[#allocation80_spill]] %s4922_s17 }
  0x13   :  { %4989 = sst [smem:[#allocation81_spill]] %s4923_s18 }
  0x14   :  { %4990 = sst [smem:[#allocation82_spill]] %s4924_s19 }
  0x15   :  { %4991 = sst [smem:[#allocation83_spill]] %s4925_s20 }
  0x16   :  { %4992 = sst [smem:[#allocation84_spill]] %s4926_s21 }
  0x17   :  { %4993 = sst [smem:[#allocation85_spill]] %s4927_s22 }
  0x18   :  { %27 = vsyncpa [#allocation5], 0 }
  0x19   :  { %29 = vsyncpa [#allocation5 + $0x1], 0 }
  0x1a   :  { %30 = vsyncpa [#allocation8], 0 }
  0x1b   :  { %32 = vsyncpa [#allocation8 + $0x1], 0 }
  0x1c   :  { %33 = vsyncpa [#allocation11], 0 }
  0x1d   :  { %35 = vsyncpa [#allocation11 + $0x1], 0 }
  0x1e   :  { %36 = vsyncpa [#allocation14], 0 }
  0x1f   :  { %38 = vsyncpa [#allocation14 + $0x1], 0 }
  0x20   :  { %39 = vsyncpa [#allocation17], 0 }
  0x21   :  { %40 = vsyncpa [#allocation20], 0 }
  0x22   :  { %41 = vsyncpa [#allocation23], 0 }
  0x23   :  { %42 = vsyncpa [#allocation26], 0 }
  0x24   :  { %43 = vsyncpa [#allocation29], 0 }
  0x25   :  { %44 = vsyncpa [#allocation32], 0 }
  0x26   :  { %45 = vsyncpa [#allocation35], 0 }
  0x27   :  { %46 = vsyncpa [#allocation38], 0 }
  0x28   :  { %47 = vsyncpa [#allocation6], 0 }
  0x29   :  { %49 = vsyncpa [#allocation6 + $0x1], 0  ;;  %s4038_s3 = smov 0   ;;  %s4040_s28 = smov 0  }
  0x2a   :  { %s4042_s29 = smov 0   ;;  %s4044_s30 = smov 0  }
  0x2b   :  { %s4046_s4 = smov 0   ;;  %s4048_s0 = smov 0  }
  0x2c LB: > { %4994 = sst [smem:[#allocation55_spill]] %s3871_s3  ;;  %s4069_s23 = sadd.s32 4294967295, %s3891_s0   ;;  %s3891_s0 = sphi %s4048_s0, %s55_s0   ;;  %s3887_s4 = sphi %s4046_s4, %s5083_s4   ;;  %s3883_s30 = sphi %s4044_s30, %s5082_s30   ;;  %s3879_s29 = sphi %s4042_s29, %s5078_s29   ;;  %s3875_s28 = sphi %s4040_s28, %s5081_s28   ;;  %s3871_s3 = sphi %s4038_s3, %s5080_s3  }
  0x2d   : > { %4995 = sst [smem:[#allocation56_spill]] %s3879_s29  ;;  %p2564_p0 = scmp.ge.s32.totalorder %s3891_s0, 1 }
  0x2e   : > { %4996 = sst [smem:[#allocation57_spill]] %s3883_s30  ;;  %p4940_p1 = scmp.eq.s32.totalorder %s4069_s23, 0 }
  0x2f   : > { %4997 = sst [smem:[#allocation58_spill]] %s3891_s0  ;;  %p596_p2 = scmp.lt.s32.totalorder %s3891_s0, 3 }
  0x30   : > { %s3893_s5 = smov [#allocation12]   ;;  %s3894_s6 = smov [#allocation15]  }
  0x31   : > { %p4074_p3 = pnand %p2564_p0, %p596_p2  ;;  %s611_s24 = sshll.u32 %s3893_s5, 4  ;;  %s612_s24 = int_to_ptr.vmem [resolvable:$true] %s611_s24 }
  0x32   : > { %s621_s25 = sshll.u32 %s3894_s6, 4  ;;  %s3895_s2 = smov [#allocation16]   ;;  %s4087_s25 = int_to_ptr.vmem [resolvable:$true] %s621_s25 }
  0x33   : > { %s4998_s1 = scalar_select %p4074_p3, 1, 0 }
  0x34   : > { %p2913_p5 = pneg %p4074_p3  ;;  %s4089_s27 = sshll.u32 %s3895_s2, 4  ;;  %s636_s27 = int_to_ptr.vmem [resolvable:$true] %s4089_s27 }
  0x35   : > { %4999 = sst [smem:[#allocation59_spill]] %s4998_s1  ;;  %s5001_s5 = sld [smem:[#allocation67_spill]] }
  0x36   : > { %p4083_p6 = pnand %p2913_p5, %p4940_p1 }
  0x38   : > { %s5000_s26 = scalar_select %p4083_p6, 1, 0 }
  0x39   : > { %p4099_p8 = pneg %p4083_p6 }
  0x3b   : > { %s3131_s21 = scalar_lea.hbm %s5001_s5, 128 }
  0x3c   : > { %p3132_p7 = scmp.ne.s32.totalorder %s5001_s5, %s3131_s21  ;;  %p3138_p11 = scmp.lt.u32.totalorder %s3131_s21, %s5001_s5 }
  0x3d   : > { %s5002_s6 = scalar_select %p4099_p8, 1, 0 }
  0x3e   : > { %p3134_p9 = pnand %p4099_p8, %p3132_p7 }
  0x40   : > { %p3135_p10 = pneg %p3134_p9 }
  0x42   : > { %p3140_p12 = pnand %p3138_p11, %p3135_p10 }
  0x44   : > { %3143 = shalt.err (!%p3140_p12)
}
  0x45   : > { %s3144_s22 = scalar_lea.vmem %s612_s24, 128  ;;  %p3152_p5 = scmp.lt.s32.totalorder %s612_s24, %s612_s24 }
  0x46   : > { %p3145_p13 = scmp.ne.s32.totalorder %s612_s24, %s3144_s22  ;;  %p3153_p4 = scmp.lt.s32.totalorder %s3144_s22, %s3144_s22 }
  0x48   : > { %p3147_p0 = pnand %p3145_p13, %p4099_p8  ;;  %p3154_p1 = por %p3153_p4, %p3152_p5 }
  0x4a   : > { %p3148_p2 = pneg %p3147_p0 }
  0x4c   : > { %p3155_p3 = pnand %p3154_p1, %p3148_p2 }
  0x4e   : > { %3158 = shalt.err (!%p3155_p3)
}
  0x4f   : > { %2916 = dma.hbm_to_vmem [thread:$0]  (!%p4083_p6), %s5001_s5, 128, %s612_s24, [#allocation11]  }
  0x50   : > { %s5003_s1 = sld [smem:[#allocation69_spill]] }
  0x56   : > { %s3159_s2 = scalar_lea.hbm %s5003_s1, 256 }
  0x57   : > { %p3160_p7 = scmp.ne.s32.totalorder %s5003_s1, %s3159_s2  ;;  %p3166_p1 = scmp.lt.u32.totalorder %s3159_s2, %s5003_s1 }
  0x59   : > { %p3162_p9 = pnand %p3160_p7, %p4099_p8 }
  0x5b   : > { %p3163_p4 = pneg %p3162_p9 }
  0x5d   : > { %p3168_p3 = pnand %p3166_p1, %p3163_p4 }
  0x5f   : > { %3171 = shalt.err (!%p3168_p3)
}
  0x60   : > { %s3172_s24 = scalar_lea.vmem %s4087_s25, 256  ;;  %p3180_p13 = scmp.lt.s32.totalorder %s4087_s25, %s4087_s25 }
  0x61   : > { %p3173_p10 = scmp.ne.s32.totalorder %s4087_s25, %s3172_s24  ;;  %p3181_p0 = scmp.lt.s32.totalorder %s3172_s24, %s3172_s24 }
  0x63   : > { %p3175_p11 = pnand %p3173_p10, %p4099_p8  ;;  %p3182_p2 = por %p3181_p0, %p3180_p13 }
  0x65   : > { %p3176_p12 = pneg %p3175_p11 }
  0x67   : > { %p3183_p5 = pnand %p3182_p2, %p3176_p12 }
  0x69   : > { %3186 = shalt.err (!%p3183_p5)
}
  0x6a   : > { %s4946_s14 = smov 64   ;;  %s4948_s12 = smov 4  }
  0x6b   : > { %2919 = dma.hbm_to_vmem [thread:$0]  (!%p4083_p6), %s5003_s1, 256, %s4087_s25, [#allocation14], %s4946_s14, %s4946_s14, %s4948_s12  }
  0x6c   : > { %s5004_s7 = sld [smem:[#allocation70_spill]] }
  0x72   : > { %s3187_s21 = scalar_lea.hbm %s5004_s7, 16 }
  0x73   : > { %p3188_p7 = scmp.ne.s32.totalorder %s5004_s7, %s3187_s21  ;;  %p3194_p1 = scmp.lt.u32.totalorder %s3187_s21, %s5004_s7 }
  0x75   : > { %p3190_p9 = pnand %p3188_p7, %p4099_p8 }
  0x77   : > { %p3191_p4 = pneg %p3190_p9 }
  0x79   : > { %p3196_p3 = pnand %p3194_p1, %p3191_p4 }
  0x7b   : > { %3199 = shalt.err (!%p3196_p3)
}
  0x7c   : > { %s3200_s16 = scalar_lea.vmem %s636_s27, 16  ;;  %s3207_s25 = scalar_lea.vmem %s636_s27, 32 }
  0x7d   : > { %p3201_p10 = scmp.ne.s32.totalorder %s636_s27, %s3200_s16  ;;  %p3208_p13 = scmp.lt.s32.totalorder %s636_s27, %s636_s27 }
  0x7e   : > { %p3209_p0 = scmp.lt.s32.totalorder %s3207_s25, %s3200_s16 }
  0x7f   : > { %p3203_p11 = pnand %p3201_p10, %p4099_p8 }
  0x80   : > { %p3210_p2 = por %p3209_p0, %p3208_p13 }
  0x81   : > { %p3204_p12 = pneg %p3203_p11 }
  0x83   : > { %p3211_p5 = pnand %p3210_p2, %p3204_p12 }
  0x85   : > { %3214 = shalt.err (!%p3211_p5)
}
  0x86   : > { %2922 = dma.hbm_to_vmem [thread:$0]  (!%p4083_p6), %s5004_s7, 16, %s636_s27, [#allocation17]  }
  0x87   : > { %s3898_s5 = smov [#allocation19]   ;;  %s3899_s21 = smov [#allocation22]  }
  0x88   : > { %s659_s18 = sshll.u32 %s3898_s5, 4  ;;  %s683_s2 = sshll.u32 %s3899_s21, 4  ;;  %s660_s18 = int_to_ptr.vmem [resolvable:$true] %s659_s18  ;;  %s684_s2 = int_to_ptr.vmem [resolvable:$true] %s683_s2 }
  0x89   : > { %s5005_s9 = sld [smem:[#allocation72_spill]] }
  0x8f   : > { %s3215_s14 = scalar_lea.hbm %s5005_s9, 16 }
  0x90   : > { %p3216_p7 = scmp.ne.s32.totalorder %s5005_s9, %s3215_s14  ;;  %p3222_p1 = scmp.lt.u32.totalorder %s3215_s14, %s5005_s9 }
  0x92   : > { %p3218_p9 = pnand %p3216_p7, %p4099_p8 }
  0x94   : > { %p3219_p4 = pneg %p3218_p9 }
  0x96   : > { %p3224_p3 = pnand %p3222_p1, %p3219_p4 }
  0x98   : > { %3227 = shalt.err (!%p3224_p3)
}
  0x99   : > { %s3228_s27 = scalar_lea.vmem %s660_s18, 16  ;;  %s3235_s30 = scalar_lea.vmem %s660_s18, 32 }
  0x9a   : > { %p3229_p10 = scmp.ne.s32.totalorder %s660_s18, %s3228_s27  ;;  %p3236_p13 = scmp.lt.s32.totalorder %s660_s18, %s660_s18 }
  0x9b   : > { %p3237_p0 = scmp.lt.s32.totalorder %s3235_s30, %s3228_s27 }
  0x9c   : > { %p3231_p11 = pnand %p3229_p10, %p4099_p8 }
  0x9d   : > { %p3238_p2 = por %p3237_p0, %p3236_p13 }
  0x9e   : > { %p3232_p12 = pneg %p3231_p11 }
  0xa0   : > { %p3239_p5 = pnand %p3238_p2, %p3232_p12 }
  0xa2   : > { %3242 = shalt.err (!%p3239_p5)
}
  0xa3   : > { %2928 = dma.hbm_to_vmem [thread:$0]  (!%p4083_p6), %s5005_s9, 16, %s660_s18, [#allocation20]  }
  0xa4   : > { %s5006_s11 = sld [smem:[#allocation74_spill]] }
  0xaa   : > { %s3243_s22 = scalar_lea.hbm %s5006_s11, 16 }
  0xab   : > { %p3244_p7 = scmp.ne.s32.totalorder %s5006_s11, %s3243_s22  ;;  %p3250_p1 = scmp.lt.u32.totalorder %s3243_s22, %s5006_s11 }
  0xad   : > { %p3246_p9 = pnand %p3244_p7, %p4099_p8 }
  0xaf   : > { %p3247_p4 = pneg %p3246_p9 }
  0xb1   : > { %p3252_p3 = pnand %p3250_p1, %p3247_p4 }
  0xb3   : > { %3255 = shalt.err (!%p3252_p3)
}
  0xb4   : > { %s3256_s27 = scalar_lea.vmem %s684_s2, 16  ;;  %s3263_s18 = scalar_lea.vmem %s684_s2, 32 }
  0xb5   : > { %p3257_p10 = scmp.ne.s32.totalorder %s684_s2, %s3256_s27  ;;  %p3264_p13 = scmp.lt.s32.totalorder %s684_s2, %s684_s2 }
  0xb6   : > { %p3265_p0 = scmp.lt.s32.totalorder %s3263_s18, %s3256_s27 }
  0xb7   : > { %p3259_p11 = pnand %p3257_p10, %p4099_p8 }
  0xb8   : > { %p3266_p2 = por %p3265_p0, %p3264_p13 }
  0xb9   : > { %p3260_p12 = pneg %p3259_p11 }
  0xbb   : > { %p3267_p5 = pnand %p3266_p2, %p3260_p12 }
  0xbd   : > { %3270 = shalt.err (!%p3267_p5)
}
  0xbe   : > { %2934 = dma.hbm_to_vmem [thread:$0]  (!%p4083_p6), %s5006_s11, 16, %s684_s2, [#allocation23]  }
  0xbf   : > { %s3900_s21 = smov [#allocation25]   ;;  %s3901_s12 = smov [#allocation28]  }
  0xc0   : > { %s707_s14 = sshll.u32 %s3900_s21, 4  ;;  %s729_s22 = sshll.u32 %s3901_s12, 4  ;;  %s708_s14 = int_to_ptr.vmem [resolvable:$true] %s707_s14  ;;  %s730_s22 = int_to_ptr.vmem [resolvable:$true] %s729_s22 }
  0xc1   : > { %s5007_s13 = sld [smem:[#allocation76_spill]] }
  0xc7   : > { %s3271_s25 = scalar_lea.hbm %s5007_s13, 16 }
  0xc8   : > { %p3272_p7 = scmp.ne.s32.totalorder %s5007_s13, %s3271_s25  ;;  %p3278_p1 = scmp.lt.u32.totalorder %s3271_s25, %s5007_s13 }
  0xca   : > { %p3274_p9 = pnand %p3272_p7, %p4099_p8 }
  0xcc   : > { %p3275_p4 = pneg %p3274_p9 }
  0xce   : > { %p3280_p3 = pnand %p3278_p1, %p3275_p4 }
  0xd0   : > { %3283 = shalt.err (!%p3280_p3)
}
  0xd1   : > { %s3284_s2 = scalar_lea.vmem %s708_s14, 16  ;;  %s3291_s5 = scalar_lea.vmem %s708_s14, 32 }
  0xd2   : > { %p3285_p10 = scmp.ne.s32.totalorder %s708_s14, %s3284_s2  ;;  %p3292_p13 = scmp.lt.s32.totalorder %s708_s14, %s708_s14 }
  0xd3   : > { %p3293_p0 = scmp.lt.s32.totalorder %s3291_s5, %s3284_s2 }
  0xd4   : > { %p3287_p11 = pnand %p3285_p10, %p4099_p8 }
  0xd5   : > { %p3294_p2 = por %p3293_p0, %p3292_p13 }
  0xd6   : > { %p3288_p12 = pneg %p3287_p11 }
  0xd8   : > { %p3295_p5 = pnand %p3294_p2, %p3288_p12 }
  0xda   : > { %3298 = shalt.err (!%p3295_p5)
}
  0xdb   : > { %2940 = dma.hbm_to_vmem [thread:$0]  (!%p4083_p6), %s5007_s13, 16, %s708_s14, [#allocation26]  }
  0xdc   : > { %s5008_s15 = sld [smem:[#allocation78_spill]] }
  0xe2   : > { %s3299_s25 = scalar_lea.hbm %s5008_s15, 16 }
  0xe3   : > { %p3300_p7 = scmp.ne.s32.totalorder %s5008_s15, %s3299_s25  ;;  %p3306_p1 = scmp.lt.u32.totalorder %s3299_s25, %s5008_s15 }
  0xe5   : > { %p3302_p9 = pnand %p3300_p7, %p4099_p8 }
  0xe7   : > { %p3303_p4 = pneg %p3302_p9 }
  0xe9   : > { %p3308_p3 = pnand %p3306_p1, %p3303_p4 }
  0xeb   : > { %3311 = shalt.err (!%p3308_p3)
}
  0xec   : > { %s3312_s2 = scalar_lea.vmem %s730_s22, 16  ;;  %s3319_s14 = scalar_lea.vmem %s730_s22, 32 }
  0xed   : > { %p3313_p10 = scmp.ne.s32.totalorder %s730_s22, %s3312_s2  ;;  %p3320_p13 = scmp.lt.s32.totalorder %s730_s22, %s730_s22 }
  0xee   : > { %p3321_p0 = scmp.lt.s32.totalorder %s3319_s14, %s3312_s2 }
  0xef   : > { %p3315_p11 = pnand %p3313_p10, %p4099_p8 }
  0xf0   : > { %p3322_p2 = por %p3321_p0, %p3320_p13 }
  0xf1   : > { %p3316_p12 = pneg %p3315_p11 }
  0xf3   : > { %p3323_p5 = pnand %p3322_p2, %p3316_p12 }
  0xf5   : > { %3326 = shalt.err (!%p3323_p5)
}
  0xf6   : > { %2946 = dma.hbm_to_vmem [thread:$0]  (!%p4083_p6), %s5008_s15, 16, %s730_s22, [#allocation29]  }
  0xf7   : > { %s3902_s12 = smov [#allocation31]   ;;  %s3903_s16 = smov [#allocation34]  }
  0xf8   : > { %s751_s24 = sshll.u32 %s3902_s12, 4  ;;  %s775_s25 = sshll.u32 %s3903_s16, 4  ;;  %s752_s24 = int_to_ptr.vmem [resolvable:$true] %s751_s24  ;;  %s776_s25 = int_to_ptr.vmem [resolvable:$true] %s775_s25 }
  0xf9   : > { %s5009_s17 = sld [smem:[#allocation80_spill]] }
  0xff   : > { %s3327_s18 = scalar_lea.hbm %s5009_s17, 16 }
 0x100   : > { %p3328_p7 = scmp.ne.s32.totalorder %s5009_s17, %s3327_s18  ;;  %p3334_p1 = scmp.lt.u32.totalorder %s3327_s18, %s5009_s17 }
 0x102   : > { %p3330_p9 = pnand %p3328_p7, %p4099_p8 }
 0x104   : > { %p3331_p4 = pneg %p3330_p9 }
 0x106   : > { %p3336_p3 = pnand %p3334_p1, %p3331_p4 }
 0x108   : > { %3339 = shalt.err (!%p3336_p3)
}
 0x109   : > { %s3340_s22 = scalar_lea.vmem %s752_s24, 16  ;;  %s3347_s21 = scalar_lea.vmem %s752_s24, 32 }
 0x10a   : > { %p3341_p10 = scmp.ne.s32.totalorder %s752_s24, %s3340_s22  ;;  %p3348_p13 = scmp.lt.s32.totalorder %s752_s24, %s752_s24 }
 0x10b   : > { %p3349_p0 = scmp.lt.s32.totalorder %s3347_s21, %s3340_s22 }
 0x10c   : > { %p3343_p11 = pnand %p3341_p10, %p4099_p8 }
 0x10d   : > { %p3350_p2 = por %p3349_p0, %p3348_p13 }
 0x10e   : > { %p3344_p12 = pneg %p3343_p11 }
 0x110   : > { %p3351_p5 = pnand %p3350_p2, %p3344_p12 }
 0x112   : > { %3354 = shalt.err (!%p3351_p5)
}
 0x113   : > { %2952 = dma.hbm_to_vmem [thread:$0]  (!%p4083_p6), %s5009_s17, 16, %s752_s24, [#allocation32]  }
 0x114   : > { %s5010_s19 = sld [smem:[#allocation82_spill]] }
 0x11a   : > { %s3355_s18 = scalar_lea.hbm %s5010_s19, 16 }
 0x11b   : > { %p3356_p7 = scmp.ne.s32.totalorder %s5010_s19, %s3355_s18  ;;  %p3362_p1 = scmp.lt.u32.totalorder %s3355_s18, %s5010_s19 }
 0x11d   : > { %p3358_p9 = pnand %p3356_p7, %p4099_p8 }
 0x11f   : > { %p3359_p4 = pneg %p3358_p9 }
 0x121   : > { %p3364_p3 = pnand %p3362_p1, %p3359_p4 }
 0x123   : > { %3367 = shalt.err (!%p3364_p3)
}
 0x124   : > { %s3368_s22 = scalar_lea.vmem %s776_s25, 16  ;;  %s3375_s24 = scalar_lea.vmem %s776_s25, 32 }
 0x125   : > { %p3369_p10 = scmp.ne.s32.totalorder %s776_s25, %s3368_s22  ;;  %p3376_p13 = scmp.lt.s32.totalorder %s776_s25, %s776_s25 }
 0x126   : > { %p3377_p0 = scmp.lt.s32.totalorder %s3375_s24, %s3368_s22 }
 0x127   : > { %p3371_p11 = pnand %p3369_p10, %p4099_p8 }
 0x128   : > { %p3378_p2 = por %p3377_p0, %p3376_p13 }
 0x129   : > { %p3372_p12 = pneg %p3371_p11 }
 0x12b   : > { %p3379_p5 = pnand %p3378_p2, %p3372_p12 }
 0x12d   : > { %3382 = shalt.err (!%p3379_p5)
}
 0x12e   : > { %2958 = dma.hbm_to_vmem [thread:$0]  (!%p4083_p6), %s5010_s19, 16, %s776_s25, [#allocation35]  }
 0x12f   : > { %s2563_s16 = sadd.s32 4294967294, %s3891_s0   ;;  %s67_s20 = sadd.s32 1, %s3887_s4 }
 0x130   : > { %s76_s27 = sadd.s32 1, %s3879_s29  ;;  %p69_p7 = scmp.ge.s32.totalorder %s67_s20, 2 }
 0x131   : > { %p83_p9 = scmp.ne.s32.totalorder %s3879_s29, %s3875_s28  ;;  %p84_p4 = scmp.eq.s32.totalorder %s3891_s0, 0 }
 0x132   : > { %p89_p1 = scmp.ne.s32.totalorder %s3875_s28, %s3871_s3  ;;  %s5085_s20 = smov (%p69_p7, %s67_s20), 0 }
 0x133   : > { %5011 = sst [smem:[#allocation60_spill]] %s5085_s20  ;;  %p4278_p3 = por %p84_p4, %p83_p9 }
 0x134   : > { %p5013_p10 = scmp.eq.s32.totalorder %s4069_s23, 0  ;;  %s71_s30 = ssub.s32 %s3887_s4, %s5085_s20 }
 0x135   : > { %p583_p12 = scmp.eq.s32.totalorder %s4069_s23, 1  ;;  %p74_p13 = scmp.eq.s32.totalorder %s71_s30, 0 }
 0x136   : > { %p4284_p11 = por %p5013_p10, %p89_p1  ;;  %p589_p0 = scmp.eq.s32.totalorder %s2563_s16, 1 }
 0x137   : > { %p4291_p2 = por %p583_p12, %p83_p9  ;;  %p3002_p5 = scmp.lt.s32.totalorder %s3891_s0, 2 }
 0x138   : > { %s5014_s25 = scalar_select %p4284_p11, 1, 0 }
 0x139   : > { %s5015_s2 = scalar_select %p4291_p2, 1, 0 }
 0x13a   : > { %s4297_s14 = scalar_select %p74_p13, %s3879_s29, %s76_s27  }
 0x13b   : > { %p4299_p7 = por %p589_p0, %p89_p1  ;;  %s4304_s22 = sand.u32 1, %s3879_s29  }
 0x13c   : > { %5016 = sst [smem:[#allocation61_spill]] %s4297_s14  ;;  %s4307_s24 = sshll.u32 %s4304_s22, 3 }
 0x13d   : > { %s5017_s5 = scalar_select %p4299_p7, 1, 0 }
 0x13e   : > { %s4310_s21 = sshll.u32 %s3887_s4, 7  ;;  %p4314_p9 = pnand %p3002_p5, %p4278_p3 }
 0x13f   : > { %5018 = sst [smem:[#allocation62_spill]] %s5017_s5  ;;  %s4319_s16 = sand.u32 1, %s3891_s0  }
 0x140   : > { %s5019_s12 = scalar_select %p4314_p9, 1, 0 }
 0x141   : > { %s5020_s1 = sld [smem:[#allocation64_spill]]  ;;  %s833_s9 = scalar_lea.vmem [#allocation7], %s4307_s24 }
 0x142   : > { %s841_s18 = sshll.u32 %s833_s9, 4  ;;  %s3904_s11 = smov [#allocation18]   ;;  %s4328_s18 = int_to_ptr.vmem [resolvable:$true] %s841_s18 }
 0x143   : > { %s4330_s13 = sshll.u32 %s3904_s11, 4  ;;  %s4961_s15 = scalar_lea.sflag [#allocation8], %s4319_s16  ;;  %s646_s13 = int_to_ptr.vmem [resolvable:$true] %s4330_s13 }
 0x144   : > { %p4337_p1 = pneg %p4314_p9 }
 0x146   : > { %s5021_s27 = scalar_select %p4337_p1, 1, 0 }
 0x147   : > { %s4325_s7 = scalar_lea.hbm %s5020_s1, %s4310_s21  ;;  %s3388_s9 = scalar_lea.hbm %s5020_s1, 256 }
 0x148   : > { %s3383_s17 = scalar_lea.hbm %s4325_s7, 128  ;;  %p3389_p12 = scmp.lt.u32.totalorder %s4325_s7, %s5020_s1 }
 0x149   : > { %p3384_p4 = scmp.ne.s32.totalorder %s4325_s7, %s3383_s17  ;;  %p3390_p13 = scmp.lt.u32.totalorder %s3388_s9, %s3383_s17 }
 0x14a   : > { %p3392_p5 = scmp.lt.u32.totalorder %s3383_s17, %s4325_s7 }
 0x14b   : > { %p3386_p3 = pnand %p4337_p1, %p3384_p4  ;;  %p3391_p0 = por %p3390_p13, %p3389_p12 }
 0x14d   : > { %p3387_p10 = pneg %p3386_p3  ;;  %p3393_p7 = por %p3392_p5, %p3391_p0 }
 0x14f   : > { %p3394_p2 = pnand %p3393_p7, %p3387_p10 }
 0x151   : > { %3397 = shalt.err (!%p3394_p2)
}
 0x152   : > { %s3398_s11 = scalar_lea.vmem %s4328_s18, 128  ;;  %s3905_s19 = smov [#allocation7]  }
 0x153   : > { %p3399_p4 = scmp.ne.s32.totalorder %s4328_s18, %s3398_s11  ;;  %s3403_s30 = sshll.u32 %s3905_s19, 4  ;;  %s3404_s30 = int_to_ptr.vmem [resolvable:$false] %s3403_s30 }
 0x154   : > { %s3405_s20 = scalar_lea.vmem %s3404_s30, 256  ;;  %p3406_p6 = scmp.lt.s32.totalorder %s4328_s18, %s3404_s30 }
 0x155   : > { %p3401_p3 = pnand %p3399_p4, %p4337_p1  ;;  %p3407_p8 = scmp.lt.s32.totalorder %s3405_s20, %s3398_s11 }
 0x157   : > { %p3402_p11 = pneg %p3401_p3  ;;  %p3408_p12 = por %p3407_p8, %p3406_p6 }
 0x159   : > { %p3409_p13 = pnand %p3408_p12, %p3402_p11 }
 0x15b   : > { %3412 = shalt.err (!%p3409_p13)
}
 0x15c   : > { %2971 = dma.hbm_to_vmem [thread:$0]  (!%p4314_p9), %s4325_s7, 128, %s4328_s18, %s4961_s15  }
 0x15d   : > { %s5022_s8 = sld [smem:[#allocation71_spill]]  ;;  %p5023_p8 = scmp.ne.s32.totalorder %s5002_s6, 0 }
 0x163   : > { %s3413_s9 = scalar_lea.hbm %s5022_s8, 256 }
 0x164   : > { %p3414_p6 = scmp.ne.s32.totalorder %s5022_s8, %s3413_s9  ;;  %p3420_p7 = scmp.lt.u32.totalorder %s3413_s9, %s5022_s8 }
 0x166   : > { %p3416_p11 = pnand %p3414_p6, %p5023_p8 }
 0x168   : > { %p3417_p2 = pneg %p3416_p11 }
 0x16a   : > { %p3422_p10 = pnand %p3420_p7, %p3417_p2 }
 0x16c   : > { %3425 = shalt.err (!%p3422_p10)
}
 0x16d   : > { %s3426_s1 = scalar_lea.vmem %s646_s13, 256  ;;  %p3434_p3 = scmp.lt.s32.totalorder %s646_s13, %s646_s13 }
 0x16e   : > { %p3427_p0 = scmp.ne.s32.totalorder %s646_s13, %s3426_s1  ;;  %p3435_p12 = scmp.lt.s32.totalorder %s3426_s1, %s3426_s1 }
 0x170   : > { %p3429_p5 = pnand %p3427_p0, %p5023_p8  ;;  %p3436_p13 = por %p3435_p12, %p3434_p3 }
 0x172   : > { %p3430_p4 = pneg %p3429_p5 }
 0x174   : > { %p3437_p9 = pnand %p3436_p13, %p3430_p4 }
 0x176   : > { %3440 = shalt.err (!%p3437_p9)
}
 0x177   : > { %p5024_p6 = scmp.ne.s32.totalorder %s5000_s26, 0  ;;  %s5025_s7 = smov 4  }
 0x178   : > { %s5026_s18 = smov 64   ;;  %s3906_s9 = smov [#allocation21]  }
 0x179   : > { %2925 = dma.hbm_to_vmem [thread:$0]  (!%p5024_p6), %s5022_s8, 256, %s646_s13, [#allocation17], %s5026_s18, %s5026_s18, %s5025_s7  }
 0x17a   : > { %s669_s19 = sshll.u32 %s3906_s9, 4  ;;  %s3907_s30 = smov [#allocation24]   ;;  %s670_s19 = int_to_ptr.vmem [resolvable:$true] %s669_s19 }
 0x17b   : > { %s693_s11 = sshll.u32 %s3907_s30, 4  ;;  %s5027_s10 = sld [smem:[#allocation73_spill]]  ;;  %s694_s11 = int_to_ptr.vmem [resolvable:$true] %s693_s11 }
 0x181   : > { %s3441_s15 = scalar_lea.hbm %s5027_s10, 256 }
 0x182   : > { %p3442_p9 = scmp.ne.s32.totalorder %s5027_s10, %s3441_s15  ;;  %p3448_p7 = scmp.lt.u32.totalorder %s3441_s15, %s5027_s10 }
 0x184   : > { %p3444_p11 = pnand %p3442_p9, %p5023_p8 }
 0x186   : > { %p3445_p2 = pneg %p3444_p11 }
 0x188   : > { %p3450_p10 = pnand %p3448_p7, %p3445_p2 }
 0x18a   : > { %3453 = shalt.err (!%p3450_p10)
}
 0x18b   : > { %s3454_s13 = scalar_lea.vmem %s670_s19, 256  ;;  %p3462_p3 = scmp.lt.s32.totalorder %s670_s19, %s670_s19 }
 0x18c   : > { %p3455_p0 = scmp.ne.s32.totalorder %s670_s19, %s3454_s13  ;;  %p3463_p12 = scmp.lt.s32.totalorder %s3454_s13, %s3454_s13 }
 0x18e   : > { %p3457_p5 = pnand %p3455_p0, %p5023_p8  ;;  %p3464_p13 = por %p3463_p12, %p3462_p3 }
 0x190   : > { %p3458_p4 = pneg %p3457_p5 }
 0x192   : > { %p3465_p1 = pnand %p3464_p13, %p3458_p4 }
 0x194   : > { %3468 = shalt.err (!%p3465_p1)
}
 0x195   : > { %2931 = dma.hbm_to_vmem [thread:$0]  (!%p5024_p6), %s5027_s10, 256, %s670_s19, [#allocation20], %s5026_s18, %s5026_s18, %s5025_s7  }
 0x196   : > { %s5028_s14 = sld [smem:[#allocation75_spill]] }
 0x19c   : > { %s3469_s9 = scalar_lea.hbm %s5028_s14, 256 }
 0x19d   : > { %p3470_p9 = scmp.ne.s32.totalorder %s5028_s14, %s3469_s9  ;;  %p3476_p2 = scmp.lt.u32.totalorder %s3469_s9, %s5028_s14 }
 0x19f   : > { %p3472_p1 = pnand %p3470_p9, %p5023_p8 }
 0x1a1   : > { %p3473_p11 = pneg %p3472_p1 }
 0x1a3   : > { %p3478_p7 = pnand %p3476_p2, %p3473_p11 }
 0x1a5   : > { %3481 = shalt.err (!%p3478_p7)
}
 0x1a6   : > { %s3482_s13 = scalar_lea.vmem %s694_s11, 256  ;;  %p3490_p4 = scmp.lt.s32.totalorder %s694_s11, %s694_s11 }
 0x1a7   : > { %p3483_p10 = scmp.ne.s32.totalorder %s694_s11, %s3482_s13  ;;  %p3491_p3 = scmp.lt.s32.totalorder %s3482_s13, %s3482_s13 }
 0x1a9   : > { %p3485_p0 = pnand %p3483_p10, %p5023_p8  ;;  %p3492_p12 = por %p3491_p3, %p3490_p4 }
 0x1ab   : > { %p3486_p5 = pneg %p3485_p0 }
 0x1ad   : > { %p3493_p13 = pnand %p3492_p12, %p3486_p5 }
 0x1af   : > { %3496 = shalt.err (!%p3493_p13)
}
 0x1b0   : > { %2937 = dma.hbm_to_vmem [thread:$0]  (!%p5024_p6), %s5028_s14, 256, %s694_s11, [#allocation23], %s5026_s18, %s5026_s18, %s5025_s7  }
 0x1b1   : > { %s3908_s15 = smov [#allocation27]   ;;  %s3909_s5 = smov [#allocation30]  }
 0x1b2   : > { %s718_s0 = sshll.u32 %s3908_s15, 4  ;;  %s740_s9 = sshll.u32 %s3909_s5, 4  ;;  %s719_s0 = int_to_ptr.vmem [resolvable:$true] %s718_s0  ;;  %s741_s9 = int_to_ptr.vmem [resolvable:$true] %s740_s9 }
 0x1b3   : > { %s5029_s1 = sld [smem:[#allocation77_spill]] }
 0x1b9   : > { %s3497_s17 = scalar_lea.hbm %s5029_s1, 16 }
 0x1ba   : > { %p3498_p9 = scmp.ne.s32.totalorder %s5029_s1, %s3497_s17  ;;  %p3504_p2 = scmp.lt.u32.totalorder %s3497_s17, %s5029_s1 }
 0x1bc   : > { %p3500_p1 = pnand %p3498_p9, %p5023_p8 }
 0x1be   : > { %p3501_p11 = pneg %p3500_p1 }
 0x1c0   : > { %p3506_p7 = pnand %p3504_p2, %p3501_p11 }
 0x1c2   : > { %3509 = shalt.err (!%p3506_p7)
}
 0x1c3   : > { %s3510_s11 = scalar_lea.vmem %s719_s0, 16  ;;  %s3517_s29 = scalar_lea.vmem %s719_s0, 32 }
 0x1c4   : > { %p3511_p10 = scmp.ne.s32.totalorder %s719_s0, %s3510_s11  ;;  %p3518_p4 = scmp.lt.s32.totalorder %s719_s0, %s719_s0 }
 0x1c5   : > { %p3519_p3 = scmp.lt.s32.totalorder %s3517_s29, %s3510_s11 }
 0x1c6   : > { %p3513_p0 = pnand %p3511_p10, %p5023_p8 }
 0x1c7   : > { %p3520_p12 = por %p3519_p3, %p3518_p4 }
 0x1c8   : > { %p3514_p5 = pneg %p3513_p0 }
 0x1ca   : > { %p3521_p13 = pnand %p3520_p12, %p3514_p5 }
 0x1cc   : > { %3524 = shalt.err (!%p3521_p13)
}
 0x1cd   : > { %2943 = dma.hbm_to_vmem [thread:$0]  (!%p5024_p6), %s5029_s1, 16, %s719_s0, [#allocation26]  }
 0x1ce   : > { %s5030_s30 = sld [smem:[#allocation79_spill]] }
 0x1d4   : > { %s5031_s20 = smov %s5030_s30  ;;  %s3525_s17 = scalar_lea.hbm %s5030_s30, 16 }
 0x1d5   : > { %p3526_p9 = scmp.ne.s32.totalorder %s5031_s20, %s3525_s17  ;;  %p3532_p2 = scmp.lt.u32.totalorder %s3525_s17, %s5031_s20 }
 0x1d7   : > { %p3528_p1 = pnand %p3526_p9, %p5023_p8 }
 0x1d9   : > { %p3529_p11 = pneg %p3528_p1 }
 0x1db   : > { %p3534_p7 = pnand %p3532_p2, %p3529_p11 }
 0x1dd   : > { %3537 = shalt.err (!%p3534_p7)
}
 0x1de   : > { %s3538_s8 = scalar_lea.vmem %s741_s9, 16  ;;  %s3545_s0 = scalar_lea.vmem %s741_s9, 32 }
 0x1df   : > { %p3539_p10 = scmp.ne.s32.totalorder %s741_s9, %s3538_s8  ;;  %p3546_p4 = scmp.lt.s32.totalorder %s741_s9, %s741_s9 }
 0x1e0   : > { %p3547_p3 = scmp.lt.s32.totalorder %s3545_s0, %s3538_s8 }
 0x1e1   : > { %p3541_p0 = pnand %p3539_p10, %p5023_p8 }
 0x1e2   : > { %p3548_p12 = por %p3547_p3, %p3546_p4 }
 0x1e3   : > { %p3542_p5 = pneg %p3541_p0 }
 0x1e5   : > { %p3549_p13 = pnand %p3548_p12, %p3542_p5 }
 0x1e7   : > { %3552 = shalt.err (!%p3549_p13)
}
 0x1e8   : > { %2949 = dma.hbm_to_vmem [thread:$0]  (!%p5024_p6), %s5031_s20, 16, %s741_s9, [#allocation29]  }
 0x1e9   : > { %s3910_s5 = smov [#allocation33]   ;;  %s3911_s17 = smov [#allocation36]  }
 0x1ea   : > { %s761_s30 = sshll.u32 %s3910_s5, 4  ;;  %s785_s13 = sshll.u32 %s3911_s17, 4  ;;  %s762_s30 = int_to_ptr.vmem [resolvable:$true] %s761_s30  ;;  %s786_s13 = int_to_ptr.vmem [resolvable:$true] %s785_s13 }
 0x1eb   : > { %s5032_s29 = sld [smem:[#allocation81_spill]] }
 0x1f1   : > { %s5033_s1 = smov %s5032_s29  ;;  %s3553_s14 = scalar_lea.hbm %s5032_s29, 256 }
 0x1f2   : > { %p3554_p9 = scmp.ne.s32.totalorder %s5033_s1, %s3553_s14  ;;  %p3560_p2 = scmp.lt.u32.totalorder %s3553_s14, %s5033_s1 }
 0x1f4   : > { %p3556_p1 = pnand %p3554_p9, %p5023_p8 }
 0x1f6   : > { %p3557_p11 = pneg %p3556_p1 }
 0x1f8   : > { %p3562_p7 = pnand %p3560_p2, %p3557_p11 }
 0x1fa   : > { %3565 = shalt.err (!%p3562_p7)
}
 0x1fb   : > { %s3566_s9 = scalar_lea.vmem %s762_s30, 256  ;;  %p3574_p4 = scmp.lt.s32.totalorder %s762_s30, %s762_s30 }
 0x1fc   : > { %p3567_p10 = scmp.ne.s32.totalorder %s762_s30, %s3566_s9  ;;  %p3575_p3 = scmp.lt.s32.totalorder %s3566_s9, %s3566_s9 }
 0x1fe   : > { %p3569_p0 = pnand %p3567_p10, %p5023_p8  ;;  %p3576_p12 = por %p3575_p3, %p3574_p4 }
 0x200   : > { %p3570_p5 = pneg %p3569_p0 }
 0x202   : > { %p3577_p13 = pnand %p3576_p12, %p3570_p5 }
 0x204   : > { %3580 = shalt.err (!%p3577_p13)
}
 0x205   : > { %2955 = dma.hbm_to_vmem [thread:$0]  (!%p5024_p6), %s5033_s1, 256, %s762_s30, [#allocation32], %s5026_s18, %s5026_s18, %s5025_s7  }
 0x206   : > { %s5034_s17 = sld [smem:[#allocation83_spill]] }
 0x20c   : > { %s3581_s19 = scalar_lea.hbm %s5034_s17, 1024 }
 0x20d   : > { %p3582_p9 = scmp.ne.s32.totalorder %s5034_s17, %s3581_s19  ;;  %p3588_p2 = scmp.lt.u32.totalorder %s3581_s19, %s5034_s17 }
 0x20f   : > { %p3584_p1 = pnand %p3582_p9, %p5023_p8 }
 0x211   : > { %p3585_p11 = pneg %p3584_p1 }
 0x213   : > { %p3590_p7 = pnand %p3588_p2, %p3585_p11 }
 0x215   : > { %3593 = shalt.err (!%p3590_p7)
}
 0x216   : > { %s3594_s15 = scalar_lea.vmem %s786_s13, 1024  ;;  %p3602_p4 = scmp.lt.s32.totalorder %s786_s13, %s786_s13 }
 0x217   : > { %p3595_p10 = scmp.ne.s32.totalorder %s786_s13, %s3594_s15  ;;  %p3603_p3 = scmp.lt.s32.totalorder %s3594_s15, %s3594_s15 }
 0x219   : > { %p3597_p0 = pnand %p3595_p10, %p5023_p8  ;;  %p3604_p12 = por %p3603_p3, %p3602_p4 }
 0x21b   : > { %p3598_p5 = pneg %p3597_p0 }
 0x21d   : > { %p3605_p13 = pnand %p3604_p12, %p3598_p5 }
 0x21f   : > { %3608 = shalt.err (!%p3605_p13)
}
 0x220   : > { %2961 = dma.hbm_to_vmem [thread:$0]  (!%p5024_p6), %s5034_s17, 1024, %s786_s13, [#allocation35], %s5026_s18, %s5026_s18, %s5025_s7  }
 0x221   : > { %s3912_s3 = smov [#allocation37]   ;;  %s5035_s19 = sld [smem:[#allocation84_spill]] }
 0x222   : > { %s799_s14 = sshll.u32 %s3912_s3, 4  ;;  %s800_s14 = int_to_ptr.vmem [resolvable:$true] %s799_s14 }
 0x227   : > { %s3609_s11 = scalar_lea.hbm %s5035_s19, 16 }
 0x228   : > { %p3610_p9 = scmp.ne.s32.totalorder %s5035_s19, %s3609_s11  ;;  %p3616_p2 = scmp.lt.u32.totalorder %s3609_s11, %s5035_s19 }
 0x22a   : > { %p3612_p1 = pnand %p3610_p9, %p5023_p8 }
 0x22c   : > { %p3613_p11 = pneg %p3612_p1 }
 0x22e   : > { %p3618_p7 = pnand %p3616_p2, %p3613_p11 }
 0x230   : > { %3621 = shalt.err (!%p3618_p7)
}
 0x231   : > { %s3622_s7 = scalar_lea.vmem %s800_s14, 16  ;;  %s3629_s18 = scalar_lea.vmem %s800_s14, 32 }
 0x232   : > { %p3623_p10 = scmp.ne.s32.totalorder %s800_s14, %s3622_s7  ;;  %p3630_p4 = scmp.lt.s32.totalorder %s800_s14, %s800_s14 }
 0x233   : > { %p3631_p3 = scmp.lt.s32.totalorder %s3629_s18, %s3622_s7 }
 0x234   : > { %p3625_p0 = pnand %p3623_p10, %p5023_p8 }
 0x235   : > { %p3632_p12 = por %p3631_p3, %p3630_p4 }
 0x236   : > { %p3626_p5 = pneg %p3625_p0 }
 0x238   : > { %p3633_p13 = pnand %p3632_p12, %p3626_p5 }
 0x23a   : > { %3636 = shalt.err (!%p3633_p13)
}
 0x23b   : > { %2964 = dma.hbm_to_vmem [thread:$0]  (!%p5024_p6), %s5035_s19, 16, %s800_s14, [#allocation38]  }
 0x23c   : > { %s5036_s3 = sld [smem:[#allocation63_spill]]  ;;  %s814_s11 = scalar_lea.vmem [#allocation4], %s4307_s24 }
 0x23d   : > { %s822_s29 = sshll.u32 %s814_s11, 4  ;;  %s811_s26 = scalar_lea.sflag [#allocation5], %s4304_s22  ;;  %s823_s29 = int_to_ptr.vmem [resolvable:$true] %s822_s29 }
 0x23e   : > { %p5038_p9 = scmp.ne.s32.totalorder %s5021_s27, 0 }
 0x242   : > { %s5037_s10 = smov %s5036_s3  ;;  %s4526_s5 = scalar_lea.hbm %s5036_s3, %s4310_s21 }
 0x243   : > { %s3637_s8 = scalar_lea.hbm %s4526_s5, 128  ;;  %s3642_s15 = scalar_lea.hbm %s5037_s10, 256 }
 0x244   : > { %p3638_p8 = scmp.ne.s32.totalorder %s4526_s5, %s3637_s8  ;;  %p3643_p6 = scmp.lt.u32.totalorder %s4526_s5, %s5037_s10 }
 0x245   : > { %p3644_p2 = scmp.lt.u32.totalorder %s3642_s15, %s3637_s8  ;;  %p3646_p10 = scmp.lt.u32.totalorder %s3637_s8, %s4526_s5 }
 0x246   : > { %p3640_p1 = pnand %p3638_p8, %p5038_p9 }
 0x247   : > { %p3645_p7 = por %p3644_p2, %p3643_p6 }
 0x248   : > { %p3641_p11 = pneg %p3640_p1 }
 0x249   : > { %p3647_p0 = por %p3646_p10, %p3645_p7 }
 0x24b   : > { %p3648_p5 = pnand %p3647_p0, %p3641_p11 }
 0x24d   : > { %3651 = shalt.err (!%p3648_p5)
}
 0x24e   : > { %s3652_s13 = scalar_lea.vmem %s823_s29, 128  ;;  %s3913_s30 = smov [#allocation4]  }
 0x24f   : > { %p3653_p4 = scmp.ne.s32.totalorder %s823_s29, %s3652_s13  ;;  %s3657_s9 = sshll.u32 %s3913_s30, 4  ;;  %s3658_s9 = int_to_ptr.vmem [resolvable:$false] %s3657_s9 }
 0x250   : > { %s3659_s6 = scalar_lea.vmem %s3658_s9, 256  ;;  %p3660_p13 = scmp.lt.s32.totalorder %s823_s29, %s3658_s9 }
 0x251   : > { %p3655_p3 = pnand %p3653_p4, %p5038_p9  ;;  %p3661_p8 = scmp.lt.s32.totalorder %s3659_s6, %s3652_s13 }
 0x253   : > { %p3656_p12 = pneg %p3655_p3  ;;  %p3662_p1 = por %p3661_p8, %p3660_p13 }
 0x255   : > { %p3663_p2 = pnand %p3662_p1, %p3656_p12 }
 0x257   : > { %3666 = shalt.err (!%p3663_p2)
}
 0x258   : > { %p5039_p6 = scmp.ne.s32.totalorder %s5019_s12, 0  ;;  %s5040_s8 = sld [smem:[#allocation65_spill]] }
 0x259   : > { %s852_s14 = scalar_lea.vmem [#allocation9], %s4307_s24 }
 0x25a   : > { %2968 = dma.hbm_to_vmem [thread:$0]  (!%p5039_p6), %s4526_s5, 128, %s823_s29, %s811_s26  }
 0x25b   : > { %s859_s15 = sshll.u32 %s852_s14, 4  ;;  %s860_s15 = int_to_ptr.vmem [resolvable:$true] %s859_s15 }
 0x25e   : > { %s4551_s0 = scalar_lea.hbm %s5040_s8, %s4310_s21  ;;  %s3672_s5 = scalar_lea.hbm %s5040_s8, 256 }
 0x25f   : > { %s3667_s7 = scalar_lea.hbm %s4551_s0, 128  ;;  %p3673_p0 = scmp.lt.u32.totalorder %s4551_s0, %s5040_s8 }
 0x260   : > { %p3668_p11 = scmp.ne.s32.totalorder %s4551_s0, %s3667_s7  ;;  %p3674_p5 = scmp.lt.u32.totalorder %s3672_s5, %s3667_s7 }
 0x261   : > { %p3676_p3 = scmp.lt.u32.totalorder %s3667_s7, %s4551_s0 }
 0x262   : > { %p3670_p7 = pnand %p3668_p11, %p5038_p9  ;;  %p3675_p4 = por %p3674_p5, %p3673_p0 }
 0x264   : > { %p3671_p10 = pneg %p3670_p7  ;;  %p3677_p12 = por %p3676_p3, %p3675_p4 }
 0x266   : > { %p3678_p13 = pnand %p3677_p12, %p3671_p10 }
 0x268   : > { %3681 = shalt.err (!%p3678_p13)
}
 0x269   : > { %s3682_s30 = scalar_lea.vmem %s860_s15, 128  ;;  %s3914_s9 = smov [#allocation9]  }
 0x26a   : > { %p3683_p8 = scmp.ne.s32.totalorder %s860_s15, %s3682_s30  ;;  %s3687_s6 = sshll.u32 %s3914_s9, 4  ;;  %s3688_s6 = int_to_ptr.vmem [resolvable:$false] %s3687_s6 }
 0x26b   : > { %s3689_s3 = scalar_lea.vmem %s3688_s6, 256  ;;  %p3690_p11 = scmp.lt.s32.totalorder %s860_s15, %s3688_s6 }
 0x26c   : > { %p3685_p1 = pnand %p3683_p8, %p5038_p9  ;;  %p3691_p7 = scmp.lt.s32.totalorder %s3689_s3, %s3682_s30 }
 0x26e   : > { %p3686_p2 = pneg %p3685_p1  ;;  %p3692_p6 = por %p3691_p7, %p3690_p11 }
 0x270   : > { %p3693_p0 = pnand %p3692_p6, %p3686_p2 }
 0x272   : > { %3696 = shalt.err (!%p3693_p0)
}
 0x273   : > { %p5041_p5 = scmp.ne.s32.totalorder %s5019_s12, 0  ;;  %s5042_s11 = scalar_lea.sflag [#allocation8], %s4319_s16 }
 0x274   : > { %s5043_s18 = sld [smem:[#allocation66_spill]]  ;;  %s870_s5 = scalar_lea.vmem [#allocation10], %s4307_s24 }
 0x275   : > { %2974 = dma.hbm_to_vmem [thread:$0]  (!%p5041_p5), %s4551_s0, 128, %s860_s15, %s5042_s11  }
 0x276   : > { %s877_s29 = sshll.u32 %s870_s5, 4  ;;  %s867_s26 = scalar_lea.sflag [#allocation11], %s4319_s16  ;;  %s878_s29 = int_to_ptr.vmem [resolvable:$true] %s877_s29 }
 0x27a   : > { %s4577_s13 = scalar_lea.hbm %s5043_s18, %s4310_s21  ;;  %s3702_s15 = scalar_lea.hbm %s5043_s18, 256 }
 0x27b   : > { %s3697_s30 = scalar_lea.hbm %s4577_s13, 128  ;;  %p3703_p3 = scmp.lt.u32.totalorder %s4577_s13, %s5043_s18 }
 0x27c   : > { %p3698_p6 = scmp.ne.s32.totalorder %s4577_s13, %s3697_s30  ;;  %p3704_p12 = scmp.lt.u32.totalorder %s3702_s15, %s3697_s30 }
 0x27d   : > { %p3706_p8 = scmp.lt.u32.totalorder %s3697_s30, %s4577_s13 }
 0x27e   : > { %p3700_p10 = pnand %p3698_p6, %p5038_p9  ;;  %p3705_p13 = por %p3704_p12, %p3703_p3 }
 0x280   : > { %p3701_p4 = pneg %p3700_p10  ;;  %p3707_p1 = por %p3706_p8, %p3705_p13 }
 0x282   : > { %p3708_p2 = pnand %p3707_p1, %p3701_p4 }
 0x284   : > { %3711 = shalt.err (!%p3708_p2)
}
 0x285   : > { %s3712_s24 = scalar_lea.vmem %s878_s29, 128  ;;  %s3915_s3 = smov [#allocation10]  }
 0x286   : > { %p3713_p11 = scmp.ne.s32.totalorder %s878_s29, %s3712_s24  ;;  %s3717_s11 = sshll.u32 %s3915_s3, 4  ;;  %s3718_s11 = int_to_ptr.vmem [resolvable:$false] %s3717_s11 }
 0x287   : > { %s3719_s14 = scalar_lea.vmem %s3718_s11, 256  ;;  %p3720_p6 = scmp.lt.s32.totalorder %s878_s29, %s3718_s11 }
 0x288   : > { %p3715_p7 = pnand %p3713_p11, %p5038_p9  ;;  %p3721_p10 = scmp.lt.s32.totalorder %s3719_s14, %s3712_s24 }
 0x28a   : > { %p3716_p0 = pneg %p3715_p7  ;;  %p3722_p5 = por %p3721_p10, %p3720_p6 }
 0x28c   : > { %p3723_p3 = pnand %p3722_p5, %p3716_p0 }
 0x28e   : > { %3726 = shalt.err (!%p3723_p3)
}
 0x28f   : > { %p5044_p12 = scmp.ne.s32.totalorder %s5019_s12, 0  ;;  %s2591_s7 = sshll.u32 %s3887_s4, 4 }
 0x290   : > { %s887_s5 = scalar_lea.vmem [#allocation13], %s4304_s22  ;;  %s5045_s15 = sld [smem:[#allocation68_spill]] }
 0x291   : > { %2977 = dma.hbm_to_vmem [thread:$0]  (!%p5044_p12), %s4577_s13, 128, %s878_s29, %s867_s26  }
 0x292   : > { %s894_s30 = sshll.u32 %s887_s5, 4  ;;  %s885_s21 = scalar_lea.sflag [#allocation14], %s4319_s16  ;;  %s895_s30 = int_to_ptr.vmem [resolvable:$true] %s894_s30 }
 0x296   : > { %s4603_s6 = scalar_lea.hbm %s5045_s15, %s2591_s7  ;;  %s3732_s22 = scalar_lea.hbm %s5045_s15, 32 }
 0x297   : > { %s3727_s24 = scalar_lea.hbm %s4603_s6, 16  ;;  %p3733_p8 = scmp.lt.u32.totalorder %s4603_s6, %s5045_s15 }
 0x298   : > { %p3728_p5 = scmp.ne.s32.totalorder %s4603_s6, %s3727_s24  ;;  %p3734_p1 = scmp.lt.u32.totalorder %s3732_s22, %s3727_s24 }
 0x299   : > { %p3736_p11 = scmp.lt.u32.totalorder %s3727_s24, %s4603_s6 }
 0x29a   : > { %p3730_p4 = pnand %p3728_p5, %p5038_p9  ;;  %p3735_p2 = por %p3734_p1, %p3733_p8 }
 0x29c   : > { %p3731_p13 = pneg %p3730_p4  ;;  %p3737_p7 = por %p3736_p11, %p3735_p2 }
 0x29e   : > { %p3738_p0 = pnand %p3737_p7, %p3731_p13 }
 0x2a0   : > { %3741 = shalt.err (!%p3738_p0)
}
 0x2a1   : > { %s3742_s16 = scalar_lea.vmem %s895_s30, 16  ;;  %s3916_s11 = smov [#allocation13]  }
 0x2a2   : > { %p3743_p6 = scmp.ne.s32.totalorder %s895_s30, %s3742_s16  ;;  %s3747_s14 = sshll.u32 %s3916_s11, 4  ;;  %s3748_s14 = int_to_ptr.vmem [resolvable:$false] %s3747_s14 }
 0x2a3   : > { %s3749_s7 = scalar_lea.vmem %s3748_s14, 32  ;;  %p3750_p5 = scmp.lt.s32.totalorder %s895_s30, %s3748_s14 }
 0x2a4   : > { %p3745_p10 = pnand %p3743_p6, %p5038_p9  ;;  %p3751_p4 = scmp.lt.s32.totalorder %s3749_s7, %s3742_s16 }
 0x2a6   : > { %p3746_p3 = pneg %p3745_p10  ;;  %p3752_p12 = por %p3751_p4, %p3750_p5 }
 0x2a8   : > { %p3753_p1 = pnand %p3752_p12, %p3746_p3 }
 0x2aa   : > { %3756 = shalt.err (!%p3753_p1)
}
 0x2ab   : > { %p5046_p8 = scmp.ne.s32.totalorder %s5019_s12, 0  ;;  %s5047_s5 = sld [smem:[#allocation59_spill]] }
 0x2ad   : > { %2980 = dma.hbm_to_vmem [thread:$0]  (!%p5046_p8), %s4603_s6, 16, %s895_s30, %s885_s21  }
 0x2b1   : > { %p5048_p13 = scmp.ne.s32.totalorder %s5047_s5, 0 }
 0x2b2   : > { %s4626_s27 = sand.u32 (!%p5048_p13), 1, %s3875_s28   ;;  %p5049_p9 = scmp.ne.s32.totalorder (!%p5048_p13), %s5014_s25, 0 }
 0x2b3   : > { %903 = sbr.rel (%p5048_p13) target bundleno = 3652 (0xe44), region = 108  ;;  %s4629_s9 = sshll.u32 (!%p5048_p13), %s4626_s27, 3 }
 0x2b4   : > { %s906_s0 = scalar_lea.sflag (!%p5048_p13), [#allocation5], %s4626_s27  ;;  %s909_s24 = scalar_lea.vmem (!%p5048_p13), [#allocation4], %s4629_s9 }
 0x2ba   : > { %3810 = dma.done.wait (%p5049_p9), %s906_s0, 128  }
 0x2bb   : > { %3812 = vsyncadd (%p5049_p9), %s906_s0, 4294967168  ;;  %s914_s12 = sand.u32 1, %s4069_s23   ;;  %s918_s6 = scalar_lea.vmem [#allocation7], %s4629_s9 }
 0x2bc   : > { %s915_s30 = scalar_lea.sflag [#allocation8], %s914_s12 }
 0x2bd   : > { %3814 = dma.done.wait (%p5049_p9), %s915_s30, 256  }
 0x2be   : > { %3816 = vsyncadd (%p5049_p9), %s915_s30, 4294967040  ;;  %s927_s21 = scalar_lea.vmem [#allocation9], %s4629_s9  ;;  %s933_s13 = scalar_lea.sflag [#allocation11], %s914_s12 }
 0x2bf   : > { %s936_s29 = scalar_lea.vmem [#allocation10], %s4629_s9 }
 0x2c0   : > { %3818 = dma.done.wait (%p5049_p9), %s933_s13, 128  }
 0x2c1   : > { %3820 = vsyncadd (%p5049_p9), %s933_s13, 4294967168  ;;  %p5050_p12 = scmp.eq.s32.totalorder %s4069_s23, 0 }
 0x2c3   : > { %3822 = dma.done.wait (%p5050_p12), [#allocation11], 128   ;;  %p5051_p2 = pmov %p5050_p12 }
 0x2c4   : > { %s946_s22 = scalar_lea.sflag [#allocation14], %s914_s12  ;;  %s948_s26 = scalar_lea.vmem [#allocation13], %s4626_s27 }
 0x2c5   : > { %3824 = vsyncadd (%p5051_p2), [#allocation11], 4294967168 }
 0x2c6   : > { %3826 = dma.done.wait (%p5049_p9), %s946_s22, 16  }
 0x2c7   : > { %3828 = vsyncadd (%p5049_p9), %s946_s22, 4294967280  ;;  %p5052_p11 = pmov %p5051_p2 }
 0x2c8   : > { %p5053_p7 = pmov %p5051_p2 }
 0x2c9   : > { %3830 = dma.done.wait (%p5052_p11), [#allocation14], 256  }
 0x2ca   : > { %3832 = vsyncadd (%p5053_p7), [#allocation14], 4294967040  ;;  %p5054_p0 = pmov %p5051_p2 }
 0x2cc   : > { %3834 = dma.done.wait (%p5054_p0), [#allocation17], 272   ;;  %p5055_p6 = pmov %p5054_p0 }
 0x2cd   : > { %p5056_p10 = pmov %p5054_p0 }
 0x2ce   : > { %3836 = vsyncadd (%p5055_p6), [#allocation17], 4294967024 }
 0x2cf   : > { %3838 = dma.done.wait (%p5056_p10), [#allocation20], 272   ;;  %p5057_p3 = pmov %p5054_p0 }
 0x2d0   : > { %p5058_p5 = pmov %p5054_p0 }
 0x2d1   : > { %3840 = vsyncadd (%p5057_p3), [#allocation20], 4294967024 }
 0x2d2   : > { %3842 = dma.done.wait (%p5058_p5), [#allocation23], 272   ;;  %p5059_p4 = pmov %p5054_p0 }
 0x2d3   : > { %p5060_p1 = pmov %p5054_p0 }
 0x2d4   : > { %3844 = vsyncadd (%p5059_p4), [#allocation23], 4294967024 }
 0x2d5   : > { %3846 = dma.done.wait (%p5060_p1), [#allocation26], 32   ;;  %p5061_p8 = pmov %p5054_p0 }
 0x2d6   : > { %p5062_p13 = pmov %p5054_p0 }
 0x2d7   : > { %3848 = vsyncadd (%p5061_p8), [#allocation26], 4294967264 }
 0x2d8   : > { %3850 = dma.done.wait (%p5062_p13), [#allocation29], 32   ;;  %p5063_p9 = pmov %p5054_p0 }
 0x2d9   : > { %p5064_p12 = pmov %p5054_p0 }
 0x2da   : > { %3852 = vsyncadd (%p5063_p9), [#allocation29], 4294967264 }
 0x2db   : > { %3854 = dma.done.wait (%p5064_p12), [#allocation32], 272   ;;  %p5065_p2 = pmov %p5054_p0 }
 0x2dc   : > { %p5066_p11 = pmov %p5054_p0 }
 0x2dd   : > { %3856 = vsyncadd (%p5065_p2), [#allocation32], 4294967024 }
 0x2de   : > { %3858 = dma.done.wait (%p5066_p11), [#allocation35], 1040   ;;  %p5067_p7 = pmov %p5054_p0 }
 0x2e0   : > { %3860 = vsyncadd (%p5067_p7), [#allocation35], 4294966256 }
 0x2e1   : > { %3862 = dma.done.wait (%p5054_p0), [#allocation38], 16   ;;  %p5068_p6 = pmov %p5054_p0 }
 0x2e2   : > { %vm1124_vm0 = vcmask 261120   ;;  %v1240_v0 = vld [vmem:[%s909_s24] sm:$0xff]  ;;  %v3917_v5 = vmov 0.0   ;;  %v1098_v8 = vld [vmem:[%s936_s29] sm:$0xff]  ;;  %vm3918_vm1 = vmmov 0   ;;  %vm1169_vm2 = vcmask 257024  }
 0x2e3   : > { %3864 = vsyncadd (%p5068_p6), [#allocation38], 4294967280  ;;  %v1242_v1 = vsel %vm1124_vm0, %v1240_v0, 0.0  ;;  %v1247_v2 = vmul.f32 %v1240_v0, %v1240_v0  ;;  %v3093_v4 = vld [vmem:[#allocation18] sm:$0xff]   ;;  %2709 = vmatprep.subr.bf16.mxu1 %v3917_v5  ;;  %2739 = vmatprep.subr.bf16.mxu0 %v3917_v5  ;;  %v3094_v6 = vld [vmem:[#allocation18 + $0x8] sm:$0xff]   ;;  %vm1355_vm3 = vcmask 64512  }
 0x2e4   : > { %1243 = vadd.xlane.f32.xlu0 %v1242_v1  ;;  %2710 = vmatpush3.bf16.msra.mxu1 %v3093_v4  ;;  %v1097_v7 = vld [vmem:[%s927_s21] sm:$0xff]  ;;  %v3096_v12 = vld [vmem:[#allocation21 + $0x8] sm:$0xff]   ;;  %v2623_v25 = vld [vmem:[#allocation27] ss:$0 sm:$0xff]  ;;  %s3919_s23 = smov 120   ;;  %vm1415_vm4 = vcmask 1043456  }
 0x2e5   : > { %v1248_v3 = vsel %vm1124_vm0, %v1247_v2, 0.0  ;;  %2711 = vmatprep.subr.bf16.mxu1 %v3917_v5  ;;  %v1099_v9 = vadd.f32 %v1098_v8, %v1097_v7  ;;  %2713 = vmatprep.mubr.msk.bf16.mxu1 %vm3918_vm1, %v3917_v5  ;;  %v3095_v11 = vld [vmem:[#allocation21] sm:$0xff]   ;;  %v1171_v13 = vpack.c.bf16 %v1097_v7, %v1097_v7  ;;  %v2615_v33 = vld [vmem:[#allocation19] ss:$0 sm:$0xff]  ;;  %v2619_v40 = vld [vmem:[#allocation22] ss:$0 sm:$0xff] }
 0x2e6   : > { %2741 = vmatprep.mubr.msk.bf16.mxu0 %vm3918_vm1, %v3917_v5  ;;  %v3097_v14 = vld [vmem:[#allocation15] sm:$0xff]   ;;  %v3098_v15 = vld [vmem:[#allocation15 + $0x8] sm:$0xff]   ;;  %v2625_v52 = vld [vmem:[#allocation16] ss:$0 sm:$0xff]  ;;  %s3920_s25 = smov 112   ;;  %s3921_s3 = smov 104  }
 0x2e7   : > { %v1100_v10 = vpack.c.bf16 %v1099_v9, %v1099_v9  ;;  %v2624_v27 = vld [vmem:[#allocation28] ss:$0 sm:$0xff]  ;;  %v1344_v62 = vld [vmem:[#allocation12] sm:$0xff]  ;;  %v2629_v63 = vld [vmem:[%s948_s26] ss:$0 sm:$0xff]  ;;  %s5069_s16 = sld [smem:[#allocation57_spill]] }
 0x2e8   : > { %1249 = vadd.xlane.f32.xlu0 %v1248_v3  ;;  %2712 = vmatpush3.bf16.msra.mxu1 %v3094_v6  ;;  %v1274_v29 = vld [vmem:[%s918_s6] sm:$0xff]  ;;  %s1091_s14 = scalar_lea.vmem [#allocation39], %s4629_s9  ;;  %s5070_s24 = sld [smem:[#allocation85_spill]] }
 0x2e9   : > { %2717 = vmatprep.subr.bf16.mxu1 %v3917_v5  ;;  %s2232_s7 = sshll.u32 %s1091_s14, 4  ;;  %s2218_s9 = scalar_lea.sflag [#allocation6], %s4626_s27  ;;  %s4857_s7 = int_to_ptr.vmem [resolvable:$true] %s2232_s7 }
 0x2ea   : > { %s3757_s30 = scalar_lea.vmem %s4857_s7, 128  ;;  %p5071_p3 = scmp.ne.s32.totalorder %s5015_s2, 0 }
 0x2eb   : > { %2714 = vmatmul.mubr.msk.bf16.vlgmr.msra.gmra.mrb[0].mxu1 %vm1124_vm0, %v1100_v10  ;;  %p3758_p10 = scmp.ne.s32.totalorder %s4857_s7, %s3757_s30  ;;  %s3922_s6 = smov [#allocation39]  }
 0x2ec   : > { %2721 = vmatprep.mubr.msk.bf16.mxu1 %vm3918_vm1, %v3917_v5  ;;  %2718 = vmatpush3.bf16.msra.mxu1 %v3095_v11  ;;  %s3761_s21 = sshll.u32 %s3922_s6, 4  ;;  %s3762_s21 = int_to_ptr.vmem [resolvable:$false] %s3761_s21 }
 0x2ed   : > { %2719 = vmatprep.subr.bf16.mxu1 %v3917_v5  ;;  %s2661_s11 = sshll.u32 %s5069_s16, 7  ;;  %p3759_p5 = pnand %p3758_p10, %p5071_p3 }
 0x2ee   : > { %s4855_s12 = scalar_lea.hbm %s5070_s24, %s2661_s11  ;;  %s3763_s13 = scalar_lea.vmem %s3762_s21, 256 }
 0x2ef   : > { %p3760_p4 = pneg %p3759_p5  ;;  %p3764_p1 = scmp.lt.s32.totalorder %s4857_s7, %s3762_s21 }
 0x2f0   : > { %2720 = vmatpush3.bf16.msra.mxu1 %v3096_v12  ;;  %p3765_p8 = scmp.lt.s32.totalorder %s3763_s13, %s3757_s30 }
 0x2f1   : > { %2725 = vmatprep.subr.bf16.mxu1 %v3917_v5 }
 0x2f2   : > { %p3766_p13 = por %p3765_p8, %p3764_p1 }
 0x2f3   : > { %2722 = vmatmul.mubr.msk.bf16.vlgmr.msra.gmra.mrb[4].mxu1 %vm1124_vm0, %v1171_v13 }
 0x2f4   : > { %2729 = vmatprep.mubr.msk.bf16.mxu1 %vm3918_vm1, %v3917_v5  ;;  %2726 = vmatpush3.bf16.msra.mxu1 %v3097_v14  ;;  %p3767_p9 = pnand %p3766_p13, %p3760_p4 }
 0x2f5   : > { %2727 = vmatprep.subr.bf16.mxu1 %v3917_v5 }
 0x2f8   : > { %2728 = vmatpush3.bf16.msra.mxu1 %v3098_v15 }
 0x2f9   : > { %2733 = vmatprep.subr.bf16.mxu1 %v3917_v5 }
 0x371   : > { %v1244_v16 = vpop.xlane.xlu0 %1243 }
 0x372   : > { %v1246_v17 = vmul.f32 0.03125, %v1244_v16 }
 0x374   : > { %v1252_v19 = vmul.f32 %v1246_v17, %v1246_v17  ;;  %v1254_v23 = vsub.f32 %v1240_v0, %v1246_v17  ;;  %v4753_v0 = vadd.f32 %v2629_v63, %v1344_v62 }
 0x375   : > { %v1250_v18 = vpop.xlane.xlu0 %1249 }
 0x376   : > { %v1251_v20 = vmul.f32 0.03125, %v1250_v18 }
 0x378   : > { %v1253_v21 = vsub.f32 %v1251_v20, %v1252_v19 }
 0x37a   : > { %v1255_v22 = vadd.f32 1e-05, %v1253_v21 }
 0x37c   : > { %3111 = vrsqrt.f32 %v1255_v22 }
 0x386   : > { %v3112_v24 = vpop.eup %3111 }
 0x387   : > { %v1257_v26 = vmul.f32 %v3112_v24, %v1254_v23 }
 0x389   : > { %v1265_v28 = vmul.f32 %v2623_v25, %v1257_v26 }
 0x38b   : > { %v4722_v30 = vadd.f32 %v2624_v27, %v1265_v28 }
 0x38d   : > { %v1275_v31 = vadd.f32 %v1274_v29, %v4722_v30  ;;  %v1462_v29 = vld [vmem:[#allocation24] sm:$0xf] }
 0x38f   : > { %v1276_v32 = vpack.c.bf16 %v1275_v31, %v1275_v31  ;;  %v1633_v31 = vsel %vm1415_vm4, %v1462_v29, 0 }
 0x391   : > { %2730 = vmatmul.mubr.msk.bf16.vlgmr.msra.gmra.mrb[8].mxu1 %vm1124_vm0, %v1276_v32  ;;  %v1582_v32 = vld [vmem:[#allocation24 + $0x4] sm:$0xf] }
 0x392   : > { %2735 = vmatprep.mubr.msk.bf16.mxu1 %vm3918_vm1, %v3917_v5 }
 0x3be   : > { %v1162_v34 = vpop.f32.mrb[0].mxu1 }
 0x3bf   : > { %v1163_v35 = vadd.f32 %v2615_v33, %v1162_v34  ;;  %v2715_v36 = vpop.f32.mrb[1].mxu1  ;;  %v1587_v33 = vsel %vm1415_vm4, %v1582_v32, 0 }
 0x3c0   : > { %v1165_v37 = vpop.f32.mrb[2].mxu1 }
 0x3c1   : > { %v1168_v38 = vpack.c.bf16 %v1163_v35, %v1163_v35  ;;  %v2716_v39 = vpop.f32.mrb[3].mxu1 }
 0x3c3   : > { %1170 = vst.msk [vmem:[#allocation2] sm:$0xf] %vm1169_vm2, %v1168_v38 }
 0x3c6   : > { %v1232_v41 = vpop.f32.mrb[4].mxu1 }
 0x3c7   : > { %v1233_v42 = vadd.f32 %v2619_v40, %v1232_v41  ;;  %v2723_v43 = vpop.f32.mrb[5].mxu1 }
 0x3c8   : > { %v1235_v44 = vpop.f32.mrb[6].mxu1 }
 0x3c9   : > { %v1238_v46 = vpack.c.bf16 %v1233_v42, %v1233_v42  ;;  %v2724_v47 = vpop.f32.mrb[7].mxu1 }
 0x3ca   : > { %v1353_v45 = vld [vmem:[#allocation2] sm:$0xf] }
 0x3cb   : > { %v1360_v48 = vsel %vm1355_vm3, %v1353_v45, 0  ;;  %v4730_v49 = vcombine.low %v1353_v45, %v1353_v45  ;;  %1239 = vst.msk [vmem:[#allocation3] sm:$0xf] %vm1169_vm2, %v1238_v46 }
 0x3cc   : > { %2734 = vmatpush3.bf16.xpose.msra.mxu1 %v1360_v48 }
 0x3cd   : > { %1469 = vrot.lane.b32.xlu1 %v4730_v49, %s3919_s23  ;;  %2745 = vmatprep.subr.bf16.mxu1 %v3917_v5 }
 0x3d2   : > { %v1354_v50 = vld [vmem:[#allocation3] sm:$0xf] }
 0x3d3   : > { %v1417_v51 = vsel %vm1415_vm4, %v1354_v50, 0  ;;  %v4757_v8 = vcombine.low %v1354_v50, %v1354_v50 }
 0x3d4   : > { %2740 = vmatpush3.bf16.msra.mxu0 %v1417_v51 }
 0x3d5   : > { %2751 = vmatprep.subr.bf16.mxu0 %v3917_v5 }
 0x43f   : > { %v1470_v54 = vpop.permute.xlu1 %1469 }
 0x440   : > { %v1475_v60 = vsel %vm1355_vm3, %v1470_v54, 0 }
 0x464   : > { %v1337_v53 = vpop.f32.mrb[8].mxu1 }
 0x465   : > { %v1338_v55 = vadd.f32 %v2625_v52, %v1337_v53  ;;  %v2731_v56 = vpop.f32.mrb[9].mxu1 }
 0x466   : > { %v1340_v57 = vpop.f32.mrb[10].mxu1 }
 0x467   : > { %v4738_v58 = vpack.c.bf16 %v1338_v55, %v1338_v55  ;;  %v2732_v59 = vpop.f32.mrb[11].mxu1 }
 0x469   : > { %1464 = vrot.lane.b32.xlu1 %v4738_v58, %s3919_s23  ;;  %2736 = vmatmul.mubr.msk.bf16.vlgmr.msra.gmra.mrb[12].mxu1 %vm1355_vm3, %v4738_v58 }
 0x46a   : > { %2746 = vmatpush3.bf16.xpose.msra.mxu1 %v1475_v60  ;;  %2747 = vmatprep.mubr.msk.bf16.mxu1 %vm3918_vm1, %v3917_v5 }
 0x46b   : > { %2757 = vmatprep.subr.bf16.mxu1 %v3917_v5 }
 0x4db   : > { %v1465_v61 = vpop.permute.xlu1 %1464 }
 0x4dc   : > { %2748 = vmatmul.mubr.msk.bf16.vlgmr.msra.gmra.mrb[16].mxu1 %vm1355_vm3, %v1465_v61 }
 0x4dd   : > { %2759 = vmatprep.mubr.msk.bf16.mxu1 %vm3918_vm1, %v3917_v5  ;;  %2758 = vmatpush3.bf16.msra.mxu1 %v1587_v33 }
 0x4de   : > { %2769 = vmatprep.subr.bf16.mxu1 %v3917_v5 }
 0x53c   : > { %v1396_v1 = vpop.f32.mrb[12].mxu1 }
 0x53d   : > { %v1397_v2 = vadd.f32 %v1396_v1, %v4753_v0  ;;  %v2737_v3 = vpop.f32.mrb[13].mxu1 }
 0x53e   : > { %v1399_v4 = vpop.f32.mrb[14].mxu1 }
 0x53f   : > { %v2738_v6 = vpop.f32.mrb[15].mxu1  ;;  %v1402_v7 = vsel %vm1355_vm3, %v1397_v2, -inf }
 0x540   : > { %1403 = vmax.xlane.f32.xlu0 %v1402_v7 }
 0x556   : > { %1530 = vrot.lane.b32.xlu0 %v4757_v8, %s3919_s23 }
 0x5af   : > { %v1511_v9 = vpop.f32.mrb[16].mxu1 }
 0x5b0   : > { %v1512_v10 = vadd.f32 %v1511_v9, %v4753_v0  ;;  %v2749_v11 = vpop.f32.mrb[17].mxu1 }
 0x5b1   : > { %v1514_v12 = vpop.f32.mrb[18].mxu1 }
 0x5b2   : > { %v2750_v13 = vpop.f32.mrb[19].mxu1  ;;  %v1517_v14 = vsel %vm1355_vm3, %v1512_v10, -inf }
 0x5b3   : > { %1518 = vmax.xlane.f32.xlu1 %v1517_v14 }
 0x5c4   : > { %1677 = vrot.lane.b32.xlu1 %v4730_v49, %s3920_s25 }
 0x5c8   : > { %1675 = vrot.lane.b32.xlu1 %v4738_v58, %s3920_s25 }
 0x5cd   : > { %v1404_v15 = vpop.xlane.xlu0 %1403 }
 0x5ce   : > { %v1405_v16 = vsub.f32 %v1397_v2, %v1404_v15 }
 0x5d0   : > { %v1406_v17 = vmul.f32 1.442695, %v1405_v16 }
 0x5d1   : > { %v1531_v19 = vpop.permute.xlu0 %1530 }
 0x5d2   : > { %3113 = vpow2.f32 %v1406_v17  ;;  %v1536_v21 = vsel %vm1415_vm4, %v1531_v19, 0 }
 0x5dc   : > { %v3114_v18 = vpop.eup %3113 }
 0x5dd   : > { %v1411_v20 = vpack.c.bf16 %v3114_v18, %v3114_v18  ;;  %v1408_v28 = vsel %vm1355_vm3, %v3114_v18, 0.0  ;;  %v1787_v18 = vld [vmem:[#allocation24 + $0x8] sm:$0xf] }
 0x5de   : > { %v1792_v19 = vsel %vm1415_vm4, %v1787_v18, 0 }
 0x5df   : > { %2742 = vmatmul.mubr.msk.bf16.vlgmr.msra.gmra.mrb[0].mxu0 %vm1355_vm3, %v1411_v20 }
 0x5e0   : > { %2752 = vmatpush3.bf16.msra.mxu0 %v1536_v21  ;;  %2753 = vmatprep.mubr.msk.bf16.mxu0 %vm3918_vm1, %v3917_v5 }
 0x5e1   : > { %2763 = vmatprep.subr.bf16.mxu0 %v3917_v5 }
 0x640   : > { %v1519_v22 = vpop.xlane.xlu1 %1518 }
 0x641   : > { %v1520_v23 = vsub.f32 %v1512_v10, %v1519_v22 }
 0x643   : > { %v1521_v24 = vmul.f32 1.442695, %v1520_v23 }
 0x645   : > { %3115 = vpow2.f32 %v1521_v24 }
 0x64f   : > { %v3116_v25 = vpop.eup %3115 }
 0x650   : > { %v1523_v26 = vsel %vm1355_vm3, %v3116_v25, 0.0  ;;  %v1526_v27 = vpack.c.bf16 %v3116_v25, %v3116_v25 }
 0x651   : > { %1524 = vadd.xlane.f32.xlu0 %v1523_v26 }
 0x652   : > { %2754 = vmatmul.mubr.msk.bf16.vlgmr.msra.gmra.mrb[4].mxu0 %vm1355_vm3, %v1526_v27 }
 0x653   : > { %2765 = vmatprep.mubr.msk.bf16.mxu0 %vm3918_vm1, %v3917_v5  ;;  %2764 = vmatpush3.bf16.msra.mxu0 %v1633_v31 }
 0x654   : > { %2775 = vmatprep.subr.bf16.mxu0 %v3917_v5 }
 0x655   : > { %1409 = vadd.xlane.f32.xlu0 %v1408_v28 }
 0x66b   : > { %1735 = vrot.lane.b32.xlu0 %v4757_v8, %s3920_s25 }
 0x66f   : > { %1837 = vrot.lane.b32.xlu0 %v4730_v49, %s3921_s3  ;;  %v1678_v49 = vpop.permute.xlu1 %1677 }
 0x670   : > { %v1683_v53 = vsel %vm1355_vm3, %v1678_v49, 0 }
 0x673   : > { %1835 = vrot.lane.b32.xlu0 %v4738_v58, %s3921_s3  ;;  %v1676_v54 = vpop.permute.xlu1 %1675 }
 0x6b2   : > { %v1453_v34 = vpop.f32.mrb[0].mxu0 }
 0x6b3   : > { %v2743_v35 = vpop.f32.mrb[1].mxu0 }
 0x6b4   : > { %v1456_v36 = vpop.f32.mrb[2].mxu0 }
 0x6b5   : > { %v2744_v37 = vpop.f32.mrb[3].mxu0 }
 0x6de   : > { %v1525_v38 = vpop.xlane.xlu0 %1524 }
 0x6e2   : > { %v1410_v39 = vpop.xlane.xlu0 %1409 }
 0x6e3   : > { %3117 = vrcp.f32 %v1410_v39 }
 0x6e4   : > { %3119 = vrcp.f32 %v1525_v38 }
 0x6e6   : > { %v1736_v42 = vpop.permute.xlu0 %1735 }
 0x6e7   : > { %v1741_v44 = vsel %vm1415_vm4, %v1736_v42, 0 }
 0x6ea   : > { %v1838_v13 = vpop.permute.xlu0 %1837 }
 0x6eb   : > { %v1843_v16 = vsel %vm1355_vm3, %v1838_v13, 0 }
 0x6ed   : > { %v3118_v40 = vpop.eup %3117 }
 0x6ee   : > { %v1460_v41 = vmul.f32 %v3118_v40, %v1453_v34  ;;  %v3120_v45 = vpop.eup %3119  ;;  %v1836_v17 = vpop.permute.xlu0 %1835 }
 0x6f0   : > { %v1461_v43 = vpack.c.bf16 %v1460_v41, %v1460_v41 }
 0x6f2   : > { %2766 = vmatmul.mubr.msk.bf16.vlgmr.msra.gmra.mrb[8].mxu0 %vm1355_vm3, %v1461_v43 }
 0x6f3   : > { %2776 = vmatpush3.bf16.msra.mxu0 %v1741_v44  ;;  %2777 = vmatprep.mubr.msk.bf16.mxu0 %vm3918_vm1, %v3917_v5 }
 0x6f4   : > { %2787 = vmatprep.subr.bf16.mxu0 %v3917_v5 }
 0x725   : > { %v1572_v46 = vpop.f32.mrb[4].mxu0 }
 0x726   : > { %v1579_v47 = vmul.f32 %v3120_v45, %v1572_v46  ;;  %v2755_v48 = vpop.f32.mrb[5].mxu0 }
 0x727   : > { %v1575_v50 = vpop.f32.mrb[6].mxu0 }
 0x728   : > { %v1580_v51 = vpack.c.bf16 %v1579_v47, %v1579_v47  ;;  %v2756_v52 = vpop.f32.mrb[7].mxu0 }
 0x72a   : > { %2760 = vmatmul.mubr.msk.bf16.vlgmr.msra.gmra.mrb[20].mxu1 %vm1355_vm3, %v1580_v51 }
 0x72b   : > { %2770 = vmatpush3.bf16.xpose.msra.mxu1 %v1683_v53  ;;  %2771 = vmatprep.mubr.msk.bf16.mxu1 %vm3918_vm1, %v3917_v5 }
 0x72c   : > { %2781 = vmatprep.subr.bf16.mxu1 %v3917_v5 }
 0x732   : > { %2772 = vmatmul.mubr.msk.bf16.vlgmr.msra.gmra.mrb[24].mxu1 %vm1355_vm3, %v1676_v54 }
 0x733   : > { %2783 = vmatprep.mubr.msk.bf16.mxu1 %vm3918_vm1, %v3917_v5  ;;  %2782 = vmatpush3.bf16.msra.mxu1 %v1792_v19 }
 0x734   : > { %2793 = vmatprep.subr.bf16.mxu1 %v3917_v5 }
 0x7c5   : > { %v1669_v55 = vpop.f32.mrb[8].mxu0 }
 0x7c6   : > { %v2767_v56 = vpop.f32.mrb[9].mxu0 }
 0x7c7   : > { %v1672_v57 = vpop.f32.mrb[10].mxu0 }
 0x7c8   : > { %v2768_v58 = vpop.f32.mrb[11].mxu0 }
 0x7fd   : > { %v1623_v59 = vpop.f32.mrb[20].mxu1 }
 0x7fe   : > { %v4797_v60 = vadd.f32 %v1669_v55, %v1623_v59  ;;  %v2761_v61 = vpop.f32.mrb[21].mxu1  ;;  %v2644_v59 = vld [vmem:[#allocation25] ss:$0 sm:$0xff] }
 0x7ff   : > { %v1626_v62 = vpop.f32.mrb[22].mxu1 }
 0x800   : > { %v2762_v63 = vpop.f32.mrb[23].mxu1 }
 0x805   : > { %v1719_v1 = vpop.f32.mrb[24].mxu1 }
 0x806   : > { %v1720_v2 = vadd.f32 %v1719_v1, %v4753_v0  ;;  %v2773_v3 = vpop.f32.mrb[25].mxu1 }
 0x807   : > { %v1722_v4 = vpop.f32.mrb[26].mxu1 }
 0x808   : > { %v2774_v6 = vpop.f32.mrb[27].mxu1  ;;  %v1725_v7 = vsel %vm1355_vm3, %v1720_v2, -inf  ;;  %v3101_v4 = vld [vmem:[#allocation33] sm:$0xff]  }
 0x809   : > { %1726 = vmax.xlane.f32.xlu1 %v1725_v7  ;;  %v3102_v6 = vld [vmem:[#allocation33 + $0x8] sm:$0xff]   ;;  %v3104_v7 = vld [vmem:[#allocation36 + $0x8] sm:$0xff]  }
 0x896   : > { %v1727_v9 = vpop.xlane.xlu1 %1726 }
 0x897   : > { %v1728_v10 = vsub.f32 %v1720_v2, %v1727_v9  ;;  %v3105_v9 = vld [vmem:[#allocation36 + $0x10] sm:$0xff]  }
 0x899   : > { %v1729_v11 = vmul.f32 1.442695, %v1728_v10  ;;  %v3106_v10 = vld [vmem:[#allocation36 + $0x18] sm:$0xff]  }
 0x89b   : > { %3121 = vpow2.f32 %v1729_v11  ;;  %v3107_v11 = vld [vmem:[#allocation36 + $0x20] sm:$0xff]  }
 0x8a5   : > { %v3122_v12 = vpop.eup %3121 }
 0x8a6   : > { %v1731_v14 = vsel %vm1355_vm3, %v3122_v12, 0.0  ;;  %v1734_v15 = vpack.c.bf16 %v3122_v12, %v3122_v12  ;;  %v3108_v12 = vld [vmem:[#allocation36 + $0x28] sm:$0xff]  }
 0x8a7   : > { %1732 = vadd.xlane.f32.xlu0 %v1731_v14 }
 0x8a8   : > { %2778 = vmatmul.mubr.msk.bf16.vlgmr.msra.gmra.mrb[12].mxu0 %vm1355_vm3, %v1734_v15 }
 0x8a9   : > { %2788 = vmatpush3.bf16.xpose.msra.mxu0 %v1843_v16  ;;  %2789 = vmatprep.mubr.msk.bf16.mxu0 %vm3918_vm1, %v3917_v5 }
 0x8aa   : > { %2799 = vmatprep.subr.bf16.mxu0 %v3917_v5 }
 0x8b0   : > { %2790 = vmatmul.mubr.msk.bf16.vlgmr.msra.gmra.mrb[16].mxu0 %vm1355_vm3, %v1836_v17 }
 0x8b1   : > { %2801 = vmatprep.mubr.msk.bf16.mxu0 %vm3918_vm1, %v3917_v5 }
 0x934   : > { %v1733_v20 = vpop.xlane.xlu0 %1732 }
 0x935   : > { %3123 = vrcp.f32 %v1733_v20 }
 0x93f   : > { %v3124_v21 = vpop.eup %3123 }
 0x97b   : > { %v1777_v22 = vpop.f32.mrb[12].mxu0 }
 0x97c   : > { %v1784_v23 = vmul.f32 %v3124_v21, %v1777_v22  ;;  %v2779_v24 = vpop.f32.mrb[13].mxu0  ;;  %v2645_v22 = vld [vmem:[#allocation30] ss:$0 sm:$0xff] }
 0x97d   : > { %v1780_v25 = vpop.f32.mrb[14].mxu0  ;;  %v2646_v24 = vld [vmem:[#allocation31] ss:$0 sm:$0xff] }
 0x97e   : > { %v1785_v26 = vpack.c.bf16 %v1784_v23, %v1784_v23  ;;  %v2780_v27 = vpop.f32.mrb[15].mxu0 }
 0x980   : > { %2784 = vmatmul.mubr.msk.bf16.vlgmr.msra.gmra.mrb[28].mxu1 %vm1355_vm3, %v1785_v26 }
 0x981   : > { %2795 = vmatprep.mubr.msk.bf16.mxu1 %vm3918_vm1, %v3917_v5 }
 0x983   : > { %v1879_v28 = vpop.f32.mrb[16].mxu0 }
 0x984   : > { %v1880_v29 = vadd.f32 %v1879_v28, %v4753_v0  ;;  %v2791_v31 = vpop.f32.mrb[17].mxu0  ;;  %v3109_v28 = vld [vmem:[#allocation36 + $0x30] sm:$0xff]  }
 0x985   : > { %v1882_v32 = vpop.f32.mrb[18].mxu0  ;;  %v2647_v31 = vld [vmem:[#allocation34] ss:$0 sm:$0xff] }
 0x986   : > { %v2792_v33 = vpop.f32.mrb[19].mxu0  ;;  %v1885_v34 = vsel %vm1355_vm3, %v1880_v29, -inf }
 0x987   : > { %1886 = vmax.xlane.f32.xlu1 %v1885_v34 }
 0x998   : > { %1895 = vrot.lane.b32.xlu1 %v4757_v8, %s3921_s3  ;;  %v1947_v8 = vld [vmem:[#allocation24 + $0xc] sm:$0xf] }
 0x999   : > { %v1952_v42 = vsel %vm1415_vm4, %v1947_v8, 0 }
 0x99a   : > { %2800 = vmatpush3.bf16.msra.mxu0 %v1952_v42 }
 0x99b   : > { %2813 = vmatprep.subr.bf16.mxu0 %v3917_v5 }
 0xa14   : > { %v1887_v35 = vpop.xlane.xlu1 %1886 }
 0xa15   : > { %v1888_v36 = vsub.f32 %v1880_v29, %v1887_v35  ;;  %v3110_v29 = vld [vmem:[#allocation36 + $0x38] sm:$0xff]  }
 0xa17   : > { %v1889_v37 = vmul.f32 1.442695, %v1888_v36 }
 0xa18   : > { %v1896_v38 = vpop.permute.xlu1 %1895 }
 0xa19   : > { %3125 = vpow2.f32 %v1889_v37  ;;  %v1901_v39 = vsel %vm1415_vm4, %v1896_v38, 0 }
 0xa1a   : > { %2794 = vmatpush3.bf16.msra.mxu1 %v1901_v39  ;;  %v2651_v39 = vld [vmem:[#allocation37] ss:$0 sm:$0xff] }
 0xa1b   : > { %2805 = vmatprep.subr.bf16.mxu1 %v3917_v5 }
 0xa23   : > { %v3126_v0 = vpop.eup %3125 }
 0xa24   : > { %v1891_v40 = vsel %vm1355_vm3, %v3126_v0, 0.0  ;;  %v1894_v41 = vpack.c.bf16 %v3126_v0, %v3126_v0 }
 0xa25   : > { %1892 = vadd.xlane.f32.xlu1 %v1891_v40 }
 0xa26   : > { %2796 = vmatmul.mubr.msk.bf16.vlgmr.msra.gmra.mrb[32].mxu1 %vm1355_vm3, %v1894_v41 }
 0xa27   : > { %2809 = vmatprep.mubr.msk.bf16.mxu1 %vm3918_vm1, %v3917_v5  ;;  %2806 = vmatpush3.bf16.msra.mxu1 %v3101_v4 }
 0xa28   : > { %2807 = vmatprep.subr.bf16.mxu1 %v3917_v5 }
 0xa2b   : > { %2808 = vmatpush3.bf16.msra.mxu1 %v3102_v6 }
 0xa53   : > { %v1828_v43 = vpop.f32.mrb[28].mxu1 }
 0xa54   : > { %v1834_v44 = vadd.f32 %v1828_v43, %v4797_v60  ;;  %v2785_v45 = vpop.f32.mrb[29].mxu1 }
 0xa55   : > { %v1831_v46 = vpop.f32.mrb[30].mxu1 }
 0xa56   : > { %v2786_v47 = vpop.f32.mrb[31].mxu1 }
 0xab2   : > { %v1893_v48 = vpop.xlane.xlu1 %1892 }
 0xab3   : > { %3127 = vrcp.f32 %v1893_v48 }
 0xabd   : > { %v3128_v49 = vpop.eup %3127 }
 0xaf9   : > { %v1937_v50 = vpop.f32.mrb[32].mxu1 }
 0xafa   : > { %v1944_v51 = vmul.f32 %v3128_v49, %v1937_v50  ;;  %v2797_v52 = vpop.f32.mrb[33].mxu1 }
 0xafb   : > { %v1940_v53 = vpop.f32.mrb[34].mxu1 }
 0xafc   : > { %v1945_v54 = vpack.c.bf16 %v1944_v51, %v1944_v51  ;;  %v2798_v55 = vpop.f32.mrb[35].mxu1 }
 0xafe   : > { %2802 = vmatmul.mubr.msk.bf16.vlgmr.msra.gmra.mrb[20].mxu0 %vm1355_vm3, %v1945_v54 }
 0xaff   : > { %2829 = vmatprep.mubr.msk.bf16.mxu0 %vm3918_vm1, %v3917_v5 }
 0xbd1   : > { %v1988_v56 = vpop.f32.mrb[20].mxu0 }
 0xbd2   : > { %v1994_v57 = vadd.f32 %v1988_v56, %v1834_v44  ;;  %v2803_v58 = vpop.f32.mrb[21].mxu0 }
 0xbd3   : > { %v1991_v60 = vpop.f32.mrb[22].mxu0 }
 0xbd4   : > { %v1995_v61 = vadd.f32 %v1994_v57, %v4722_v30  ;;  %v2804_v62 = vpop.f32.mrb[23].mxu0  ;;  %v3103_v30 = vld [vmem:[#allocation36] sm:$0xff]  }
 0xbd5   : > { %2814 = vmatpush3.bf16.msra.mxu0 %v3103_v30 }
 0xbd6   : > { %v4832_v63 = vadd.f32 %v2644_v59, %v1995_v61  ;;  %2815 = vmatprep.subr.bf16.mxu0 %v3917_v5 }
 0xbd8   : > { %v2004_v1 = vsel %vm1124_vm0, %v4832_v63, 0.0  ;;  %v2008_v2 = vmul.f32 %v4832_v63, %v4832_v63 }
 0xbd9   : > { %2005 = vadd.xlane.f32.xlu0 %v2004_v1  ;;  %2816 = vmatpush3.bf16.msra.mxu0 %v3104_v7 }
 0xbda   : > { %v2009_v3 = vsel %vm1124_vm0, %v2008_v2, 0.0  ;;  %2817 = vmatprep.subr.bf16.mxu0 %v3917_v5 }
 0xbdd   : > { %2010 = vadd.xlane.f32.xlu0 %v2009_v3  ;;  %2818 = vmatpush3.bf16.msra.mxu0 %v3105_v9 }
 0xbde   : > { %2819 = vmatprep.subr.bf16.mxu0 %v3917_v5 }
 0xbe1   : > { %2820 = vmatpush3.bf16.msra.mxu0 %v3106_v10 }
 0xbe2   : > { %2821 = vmatprep.subr.bf16.mxu0 %v3917_v5 }
 0xbe5   : > { %2822 = vmatpush3.bf16.msra.mxu0 %v3107_v11 }
 0xbe6   : > { %2823 = vmatprep.subr.bf16.mxu0 %v3917_v5 }
 0xbe9   : > { %2824 = vmatpush3.bf16.msra.mxu0 %v3108_v12 }
 0xbea   : > { %2825 = vmatprep.subr.bf16.mxu0 %v3917_v5 }
 0xbed   : > { %2826 = vmatpush3.bf16.msra.mxu0 %v3109_v28 }
 0xbee   : > { %2827 = vmatprep.subr.bf16.mxu0 %v3917_v5 }
 0xbf1   : > { %2828 = vmatpush3.bf16.msra.mxu0 %v3110_v29 }
 0xc66   : > { %v2006_v13 = vpop.xlane.xlu0 %2005 }
 0xc67   : > { %v2007_v14 = vmul.f32 0.03125, %v2006_v13 }
 0xc69   : > { %v2013_v16 = vmul.f32 %v2007_v14, %v2007_v14  ;;  %v2015_v20 = vsub.f32 %v4832_v63, %v2007_v14 }
 0xc6a   : > { %v2011_v15 = vpop.xlane.xlu0 %2010 }
 0xc6b   : > { %v2012_v17 = vmul.f32 0.03125, %v2011_v15 }
 0xc6d   : > { %v2014_v18 = vsub.f32 %v2012_v17, %v2013_v16 }
 0xc6f   : > { %v2016_v19 = vadd.f32 1e-05, %v2014_v18 }
 0xc71   : > { %3129 = vrsqrt.f32 %v2016_v19 }
 0xc7b   : > { %v3130_v21 = vpop.eup %3129 }
 0xc7c   : > { %v2018_v23 = vmul.f32 %v3130_v21, %v2015_v20 }
 0xc7e   : > { %v2026_v25 = vmul.f32 %v2645_v22, %v2018_v23 }
 0xc80   : > { %v2034_v26 = vadd.f32 %v2646_v24, %v2026_v25 }
 0xc82   : > { %v2035_v27 = vpack.c.bf16 %v2034_v26, %v2034_v26 }
 0xc84   : > { %2810 = vmatmul.mubr.msk.bf16.vlgmr.msra.gmra.mrb[36].mxu1 %vm1124_vm0, %v2035_v27 }
 0xd57   : > { %v2096_v32 = vpop.f32.mrb[36].mxu1 }
 0xd58   : > { %v2097_v33 = vadd.f32 %v2647_v31, %v2096_v32  ;;  %v2811_v34 = vpop.f32.mrb[37].mxu1 }
 0xd59   : > { %v2099_v35 = vpop.f32.mrb[38].mxu1 }
 0xd5a   : > { %v2102_v36 = vmax.f32 %v2097_v33, 0.0  ;;  %v2812_v37 = vpop.f32.mrb[39].mxu1 }
 0xd5c   : > { %v2103_v38 = vpack.c.bf16 %v2102_v36, %v2102_v36 }
 0xd5e   : > { %2830 = vmatmul.mubr.bf16.vlgmr.msra.gmra.mrb[24].mxu0 %v2103_v38 }
 0xe31   : > { %v2209_v0 = vpop.f32.mrb[24].mxu0 }
 0xe32   : > { %v2210_v40 = vadd.f32 %v2651_v39, %v2209_v0  ;;  %v2831_v5 = vpop.f32.mrb[25].mxu0 }
 0xe33   : > { %v2212_v41 = vpop.f32.mrb[26].mxu0 }
 0xe34   : > { %v2215_v8 = vadd.f32 %v2210_v40, %v4832_v63  ;;  %v2832_v42 = vpop.f32.mrb[27].mxu0 }
 0xe36   : > { %2216 = vst.msk [vmem:[%s1091_s14] sm:$0xff] %vm1124_vm0, %v2215_v8 }
 0xe37   : > { %3770 = shalt.err (!%p3767_p9)
}
 0xe38   : > { %s3771_s27 = scalar_lea.hbm %s4855_s12, 128  ;;  %s3775_s26 = scalar_lea.hbm %s5070_s24, 256 }
 0xe39   : > { %p3772_p12 = scmp.ne.s32.totalorder %s4855_s12, %s3771_s27  ;;  %p3776_p7 = scmp.lt.u32.totalorder %s4855_s12, %s5070_s24 }
 0xe3a   : > { %p3777_p0 = scmp.lt.u32.totalorder %s3775_s26, %s3771_s27  ;;  %p3779_p10 = scmp.lt.u32.totalorder %s3771_s27, %s4855_s12 }
 0xe3b   : > { %p3773_p2 = pnand %p3772_p12, %p5071_p3 }
 0xe3c   : > { %p3778_p6 = por %p3777_p0, %p3776_p7 }
 0xe3d   : > { %p3774_p11 = pneg %p3773_p2 }
 0xe3e   : > { %p3780_p5 = por %p3779_p10, %p3778_p6 }
 0xe40   : > { %p3781_p4 = pnand %p3780_p5, %p3774_p11 }
 0xe42   : > { %3784 = shalt.err (!%p3781_p4)
}
 0xe43   : > { %2911 = dma.vmem_to_hbm [thread:$0]  (%p5071_p3), %s4857_s7, 128, %s4855_s12, %s2218_s9  }
 0xe44 PF: > { %s5072_s3 = sld [smem:[#allocation55_spill]]  ;;  %s5073_s16 = sld [smem:[#allocation62_spill]] }
 0xe45   : > { %s5074_s11 = sld [smem:[#allocation58_spill]] }
 0xe4a   : > { %s2244_s14 = sand.u32 1, %s5072_s3   ;;  %p5075_p1 = scmp.ne.s32.totalorder %s5073_s16, 0 }
 0xe4b   : > { %p5076_p8 = scmp.ge.s32.totalorder %s5074_s11, 2  ;;  %s2245_s5 = scalar_lea.sflag [#allocation6], %s2244_s14 }
 0xe4d   : > { %p2982_p13 = pnand %p5076_p8, %p5075_p1 }
 0xe4f   : > { %3866 = dma.done.wait (!%p2982_p13), %s2245_s5, 128  }
 0xe50   : > { %3868 = vsyncadd (!%p2982_p13), %s2245_s5, 4294967168  ;;  %s55_s0 = sadd.s32 1, %s5074_s11   ;;  %s5077_s30 = sld [smem:[#allocation56_spill]] }
 0xe51   : > { %p52_p9 = scmp.ge.s32.totalorder %s55_s0, 4   ;;  %s5078_s29 = sld [smem:[#allocation61_spill]] }
 0xe52   : > { %s5079_s2 = sld [smem:[#allocation60_spill]]  ;;  %s5080_s3 = smov %s3875_s28 }
 0xe53   :  { %54 = sbr.rel (!%p52_p9) target bundleno = 44 (0x2c), region = 279 }
 0xe56   : > { %s5081_s28 = smov %s5077_s30  ;;  %s5082_s30 = smov %s3887_s4 }
 0xe58   : > { %s5083_s4 = smov %s5079_s2 }
 0xe5a   :  { %2250 = vsyncpa [#allocation5], 1 }
 0xe5b   :  { %2252 = vsyncpa [#allocation5 + $0x1], 1 }
 0xe5c   :  { %2253 = vsyncpa [#allocation8], 1 }
 0xe5d   :  { %2255 = vsyncpa [#allocation8 + $0x1], 1 }
 0xe5e   :  { %2256 = vsyncpa [#allocation11], 1 }
 0xe5f   :  { %2258 = vsyncpa [#allocation11 + $0x1], 1 }
 0xe60   :  { %2259 = vsyncpa [#allocation14], 1 }
 0xe61   :  { %2261 = vsyncpa [#allocation14 + $0x1], 1 }
 0xe62   :  { %2262 = vsyncpa [#allocation17], 1 }
 0xe63   :  { %2263 = vsyncpa [#allocation20], 1 }
 0xe64   :  { %2264 = vsyncpa [#allocation23], 1 }
 0xe65   :  { %2265 = vsyncpa [#allocation26], 1 }
 0xe66   :  { %2266 = vsyncpa [#allocation29], 1 }
 0xe67   :  { %2267 = vsyncpa [#allocation32], 1 }
 0xe68   :  { %2268 = vsyncpa [#allocation35], 1 }
 0xe69   :  { %2269 = vsyncpa [#allocation38], 1 }
 0xe6a   :  { %2270 = vsyncpa [#allocation6], 1 }
 0xe6b   :  { %2272 = vsyncpa [#allocation6 + $0x1], 1 }

</bundles_post_ra>
